<compile_context>
chip_gen: v7x
topology: tpu7x:2x2x1
jax: 0.10.0
libtpu: 0.0.40
codegen_flags: <defaults>
</compile_context>

<pallas_src>
import jax
import jax.numpy as jnp
import numpy as np
from jax.experimental import pallas as pl
from jax.experimental.pallas import tpu as pltpu

# ---------------- model hyper-parameters (static) ----------------
BATCH = 512        # demo batch (= 2 * BLOCK_B -> grid of 2 parallel tiles)
N_IN = 16          # n_inputs
WIDTH = 32         # hidden width of gate and experts
N_EXPERTS = 4
EXPERT_DEPTH = 2   # Linear+ReLU blocks per expert
GATE_DEPTH = 2     # gating depth -> (GATE_DEPTH - 1) hidden Linear+ReLU blocks

PACK = 128                 # expert-stack lane width (= N_EXPERTS*WIDTH); also gate half width
LANES = 2 * PACK           # 256-lane merged activation: [ gate | experts ]
BLOCK_B = 256              # batch rows per grid step
MXU_DTYPE = jnp.bfloat16   # weight / matmul-input dtype (jnp.float32 for 1e-5-exact checks)
NEG_PAD = -1e30            # softmax "-inf" padding for unused gate-logit lanes

assert N_EXPERTS * WIDTH == PACK, "expert packing assumes E*W == 128"
assert WIDTH <= PACK
assert GATE_DEPTH == 2 and EXPERT_DEPTH == 2, "merged 256-lane packing assumes depth 2+2"

GLANE = 0          # lane offset of the gate half
ELANE = PACK       # lane offset of the expert half

# Row offsets inside the packed weight slab (all multiples of 16 for bf16 sublane packing).
OFF_W0 = 0                     # merged input layer            : (N_IN, 256)
OFF_W1 = OFF_W0 + N_IN         # gate-hid-0 | expert-hid-0     : (256, 256) block-diagonal
OFF_W2 = OFF_W1 + LANES        # gate-out   | expert-hid-1     : (256, 256)
OFF_W3 = OFF_W2 + LANES        # expert read-out heads         : (128, 128) in lanes [0,128)
W_ROWS = OFF_W3 + PACK
assert all(o % 16 == 0 for o in (OFF_W0, OFF_W1, OFF_W2, OFF_W3, W_ROWS))

ROW_B0, ROW_B1, ROW_B2, ROW_B3 = 0, 1, 2, 3
B_ROWS = 8                     # bias slab rows padded to a sublane multiple


# ---------------- Pallas kernel ----------------
def moe_kernel(x_ref, w_ref, b_ref, out_ref):
    def dense(a, row_off, rows, bias_row, lanes):
        # bf16 weights & bf16 matmul inputs (cast once per layer), f32 acc + f32 bias.
        w = w_ref[pl.ds(row_off, rows), pl.ds(0, lanes)]
        b = b_ref[pl.ds(bias_row, 1), pl.ds(0, lanes)]
        return jnp.dot(a.astype(MXU_DTYPE), w,
                       preferred_element_type=jnp.float32) + b

    x = x_ref[...]                                                 # (BB, N_IN) f32

    # L0: merged input layer, no activation on either half.
    z = dense(x, OFF_W0, N_IN, ROW_B0, LANES)                      # (BB, 256) f32
    # L1: gate hidden 0 | expert hidden 0 (both ReLU), block-diagonal weights.
    z = jnp.maximum(dense(z, OFF_W1, LANES, ROW_B1, LANES), 0.0)
    # L2: gate output head (logits, no act) | expert hidden 1 (ReLU).
    z = dense(z, OFF_W2, LANES, ROW_B2, LANES)                     # (BB, 256) f32
    logits = z[:, :PACK]            # gate half: lanes >= N_EXPERTS carry the -1e30 pad bias
    ze = jnp.maximum(z[:, PACK:], 0.0)                             # expert half, (BB, 128)
    # L3: expert read-out heads packed as one (128,128) block; y[:, k] = expert k output.
    y = dense(ze, OFF_W3, PACK, ROW_B3, PACK)                      # (BB, 128); lanes >= E are 0

    # softmax-weighted combine without materializing the normalized gate:
    #   out = sum(e * y) / sum(e); padded lanes have e == 0 exactly (exp(-1e30 - m)).
    m = jnp.max(logits, axis=1, keepdims=True)
    e = jnp.exp(logits - m)
    num = jnp.sum(e * y, axis=1, keepdims=True)                    # (BB, 1)
    den = jnp.sum(e, axis=1, keepdims=True)                        # (BB, 1)
    out_ref[...] = (num * pl.reciprocal(den, approx=False)).astype(out_ref.dtype)


# ---------------- wrapper ----------------
def _round_up(n, m):
    return ((n + m - 1) // m) * m


@jax.jit
def moe_forward(x, w_slab, b_slab):
    batch = x.shape[0]
    bb = min(BLOCK_B, _round_up(batch, 8))        # batch tile (8 <= bb <= BLOCK_B)
    padded = _round_up(batch, bb)
    if padded != batch:
        x = jnp.pad(x, ((0, padded - batch), (0, 0)))

    out = pl.pallas_call(
        moe_kernel,
        out_shape=jax.ShapeDtypeStruct((padded, 1), jnp.float32),
        grid=(padded // bb,),
        in_specs=[
            pl.BlockSpec((bb, N_IN), lambda i: (i, 0)),
            # Parameter slabs: constant block index (fetched once, resident across
            # batch tiles) and single-buffered to reclaim the redundant 2nd buffer.
            pl.BlockSpec((W_ROWS, LANES), lambda i: (0, 0),
                         pipeline_mode=pl.Buffered(1)),
            pl.BlockSpec((B_ROWS, LANES), lambda i: (0, 0),
                         pipeline_mode=pl.Buffered(1)),
        ],
        out_specs=pl.BlockSpec((bb, 1), lambda i: (i, 0)),
        compiler_params=pltpu.CompilerParams(
            # batch tiles are independent -> shards across v7x's two TensorCores
            dimension_semantics=("parallel",),
        ),
    )(x, w_slab, b_slab)
    return out[:batch, 0]                          # (batch,) matches torch.sum(..., dim=1)


# ---------------- deterministic parameter init (PyTorch-Linear-style) ----------------
def _init_linear(key, fan_in, w_shape, b_shape):
    k1, k2 = jax.random.split(key)
    bound = 1.0 / float(np.sqrt(fan_in))
    w = jax.random.uniform(k1, w_shape, jnp.float32, -bound, bound)
    b = jax.random.uniform(k2, b_shape, jnp.float32, -bound, bound)
    return w, b


def make_params(key):
    n_keys = (1 + (GATE_DEPTH - 1) + 1) + N_EXPERTS * (1 + EXPERT_DEPTH + 1)
    keys = iter(jax.random.split(key, n_keys))
    p = {}

    # gating module
    p["gw_in"], p["gb_in"] = _init_linear(next(keys), N_IN, (N_IN, WIDTH), (WIDTH,))
    gwh, gbh = [], []
    for _ in range(GATE_DEPTH - 1):
        w, b = _init_linear(next(keys), WIDTH, (WIDTH, WIDTH), (WIDTH,))
        gwh.append(w)
        gbh.append(b)
    p["gw_hid"] = jnp.stack(gwh)                                    # (GATE_DEPTH-1, W, W)
    p["gb_hid"] = jnp.stack(gbh)                                    # (GATE_DEPTH-1, W)
    p["gw_out"], p["gb_out"] = _init_linear(next(keys), WIDTH, (WIDTH, N_EXPERTS), (N_EXPERTS,))

    # experts
    ew_in, eb_in, ew_out, eb_out = [], [], [], []
    ew_hid = [[] for _ in range(EXPERT_DEPTH)]
    eb_hid = [[] for _ in range(EXPERT_DEPTH)]
    for _ in range(N_EXPERTS):
        w, b = _init_linear(next(keys), N_IN, (N_IN, WIDTH), (WIDTH,))
        ew_in.append(w)
        eb_in.append(b)
        for d in range(EXPERT_DEPTH):
            w, b = _init_linear(next(keys), WIDTH, (WIDTH, WIDTH), (WIDTH,))
            ew_hid[d].append(w)
            eb_hid[d].append(b)
        w, b = _init_linear(next(keys), WIDTH, (WIDTH,), (1,))
        ew_out.append(w)
        eb_out.append(b[0])
    p["ew_in"] = jnp.stack(ew_in)                                   # (E, N_IN, W)
    p["eb_in"] = jnp.stack(eb_in)                                   # (E, W)
    p["ew_hid"] = jnp.stack([jnp.stack(l) for l in ew_hid])         # (D, E, W, W)
    p["eb_hid"] = jnp.stack([jnp.stack(l) for l in eb_hid])         # (D, E, W)
    p["ew_out"] = jnp.stack(ew_out)                                 # (E, W)
    p["eb_out"] = jnp.stack(eb_out)                                 # (E,)
    p["final_bias"] = jnp.zeros((N_EXPERTS,), jnp.float32)          # ExpertModel._final_bias (0.0)
    return p


# ---------------- host-side packing into two lane-dense slabs ----------------
def pack_params(p, weight_dtype=MXU_DTYPE):
    W = np.zeros((W_ROWS, LANES), np.float32)
    B = np.zeros((B_ROWS, LANES), np.float32)

    # --- merged layer 0: x(16) -> [gate(128) | experts(128)], no activation ---
    W[OFF_W0:OFF_W0 + N_IN, GLANE:GLANE + WIDTH] = np.asarray(p["gw_in"])
    B[ROW_B0, GLANE:GLANE + WIDTH] = np.asarray(p["gb_in"])
    for k in range(N_EXPERTS):
        c0 = ELANE + k * WIDTH
        W[OFF_W0:OFF_W0 + N_IN, c0:c0 + WIDTH] = np.asarray(p["ew_in"][k])
        B[ROW_B0, c0:c0 + WIDTH] = np.asarray(p["eb_in"][k])

    # --- merged layer 1 (block-diagonal): gate hidden 0 | expert hidden 0, ReLU ---
    W[OFF_W1 + GLANE:OFF_W1 + GLANE + WIDTH, GLANE:GLANE + WIDTH] = np.asarray(p["gw_hid"][0])
    B[ROW_B1, GLANE:GLANE + WIDTH] = np.asarray(p["gb_hid"][0])
    for k in range(N_EXPERTS):
        c0 = ELANE + k * WIDTH
        W[OFF_W1 + c0:OFF_W1 + c0 + WIDTH, c0:c0 + WIDTH] = np.asarray(p["ew_hid"][0, k])
        B[ROW_B1, c0:c0 + WIDTH] = np.asarray(p["eb_hid"][0, k])

    # --- merged layer 2: gate out (logits lanes 0..3, no act) | expert hidden 1 (ReLU) ---
    W[OFF_W2 + GLANE:OFF_W2 + GLANE + WIDTH, 0:N_EXPERTS] = np.asarray(p["gw_out"])
    B[ROW_B2, 0:N_EXPERTS] = np.asarray(p["gb_out"])
    B[ROW_B2, N_EXPERTS:PACK] = NEG_PAD        # padding logit lanes -> softmax prob exactly 0
    for k in range(N_EXPERTS):
        c0 = ELANE + k * WIDTH
        W[OFF_W2 + c0:OFF_W2 + c0 + WIDTH, c0:c0 + WIDTH] = np.asarray(p["ew_hid"][1, k])
        B[ROW_B2, c0:c0 + WIDTH] = np.asarray(p["eb_hid"][1, k])

    # --- layer 3: expert read-out heads, 128-lane: y[:, k] = expert k scalar output ---
    for k in range(N_EXPERTS):
        r0 = OFF_W3 + k * WIDTH
        W[r0:r0 + WIDTH, k] = np.asarray(p["ew_out"][k])
        B[ROW_B3, k] = float(p["eb_out"][k]) + float(p["final_bias"][k])

    # weight slab -> MXU dtype (bf16); bias slab stays f32 so the -1e30 padding is exact.
    return jnp.asarray(W, weight_dtype), jnp.asarray(B, jnp.float32)


# ---------------- pure-JAX reference (follows the torch module structure) ----------------
def moe_reference(x, p):
    # Weights are round-tripped through MXU_DTYPE so the check isolates the kernel's
    # packing/layering from plain bf16 weight rounding; biases and all elementwise
    # math stay f32, exactly as in the kernel.
    def q(w):
        return w.astype(MXU_DTYPE).astype(jnp.float32)

    z = x @ q(p["gw_in"]) + p["gb_in"]
    for d in range(GATE_DEPTH - 1):
        z = jnp.maximum(z @ q(p["gw_hid"][d]) + p["gb_hid"][d], 0.0)
    logits = z @ q(p["gw_out"]) + p["gb_out"]
    gate = jax.nn.softmax(logits, axis=1)

    ys = []
    for k in range(N_EXPERTS):
        ze = x @ q(p["ew_in"][k]) + p["eb_in"][k]
        for d in range(EXPERT_DEPTH):
            ze = jnp.maximum(ze @ q(p["ew_hid"][d, k]) + p["eb_hid"][d, k], 0.0)
        ys.append(ze @ q(p["ew_out"][k]) + p["eb_out"][k] + p["final_bias"][k])
    y = jnp.stack(ys, axis=1)                      # (batch, E)
    return jnp.sum(gate * y, axis=1)               # (batch,)


if __name__ == "__main__":
    key = jax.random.PRNGKey(0)
    kx, kp = jax.random.split(key)

    params = make_params(kp)
    w_slab, b_slab = pack_params(params)

    x = jax.random.normal(kx, (BATCH, N_IN), jnp.float32)
    out = jax.block_until_ready(moe_forward(x, w_slab, b_slab))
    assert out.shape == (BATCH,)

    ref = moe_reference(x, params)
    tol = 1e-5 if MXU_DTYPE == jnp.float32 else 2e-2
    np.testing.assert_allclose(np.asarray(out), np.asarray(ref), rtol=tol, atol=tol)

    # small / ragged batch path (wrapper pads up to the tile size and slices back)
    out_small = jax.block_until_ready(moe_forward(x[:8], w_slab, b_slab))
    np.testing.assert_allclose(np.asarray(out_small), np.asarray(ref[:8]),
                               rtol=tol, atol=tol)

    print("KERNEL_OK")
</pallas_src>

<mosaic_0001>
module attributes {stable_mosaic.version = 11 : i64} {
  func.func @moe_kernel(%arg0: i32, %arg1: memref<256x16xf32, #tpu.memory_space<vmem>>, %arg2: memref<656x256xbf16, #tpu.memory_space<vmem>>, %arg3: memref<8x256xf32, #tpu.memory_space<vmem>>, %arg4: memref<256x1xf32, #tpu.memory_space<vmem>>) attributes {dimension_semantics = [#tpu.dimension_semantics<parallel>], iteration_bounds = array<i64: 2>, scalar_prefetch = 0 : i64, scratch_operands = 0 : i64, tpu.core_type = #tpu.core_type<tc>, window_params = [{transform_indices = @transform_0, window_bounds = array<i64: 256, 16>}, {pipeline_mode = #tpu.pipeline_mode<synchronous>, transform_indices = @transform_1, window_bounds = array<i64: 656, 256>}, {pipeline_mode = #tpu.pipeline_mode<synchronous>, transform_indices = @transform_2, window_bounds = array<i64: 8, 256>}, {transform_indices = @transform_3, window_bounds = array<i64: 256, 1>}]} {
    %c0 = arith.constant 0 : index
    %c0_0 = arith.constant 0 : index
    %0 = vector.load %arg1[%c0, %c0_0] : memref<256x16xf32, #tpu.memory_space<vmem>>, vector<256x16xf32>
    %c0_1 = arith.constant 0 : index
    %c0_2 = arith.constant 0 : index
    %1 = vector.load %arg2[%c0_1, %c0_2] : memref<656x256xbf16, #tpu.memory_space<vmem>>, vector<16x256xbf16>
    %c0_3 = arith.constant 0 : index
    %c0_4 = arith.constant 0 : index
    %2 = vector.load %arg3[%c0_3, %c0_4] : memref<8x256xf32, #tpu.memory_space<vmem>>, vector<1x256xf32>
    %3 = arith.truncf %0 : vector<256x16xf32> to vector<256x16xbf16>
    %cst = arith.constant dense<0.000000e+00> : vector<256x256xf32>
    %4 = tpu.matmul %3, %1, %cst {dimension_numbers = #tpu.dot_dimension_numbers<[1], [0], [0], [1], [0, 0, 1, 1], [], []>} : vector<256x16xbf16>, vector<16x256xbf16>, vector<256x256xf32> -> vector<256x256xf32>
    %5 = vector.broadcast %2 : vector<1x256xf32> to vector<256x256xf32>
    %6 = arith.addf %4, %5 : vector<256x256xf32>
    %c16 = arith.constant 16 : index
    %c0_5 = arith.constant 0 : index
    %7 = vector.load %arg2[%c16, %c0_5] : memref<656x256xbf16, #tpu.memory_space<vmem>>, vector<256x256xbf16>
    %c1 = arith.constant 1 : index
    %c0_6 = arith.constant 0 : index
    %8 = vector.load %arg3[%c1, %c0_6] : memref<8x256xf32, #tpu.memory_space<vmem>>, vector<1x256xf32>
    %9 = arith.truncf %6 : vector<256x256xf32> to vector<256x256xbf16>
    %cst_7 = arith.constant dense<0.000000e+00> : vector<256x256xf32>
    %10 = tpu.matmul %9, %7, %cst_7 {dimension_numbers = #tpu.dot_dimension_numbers<[1], [0], [0], [1], [0, 0, 1, 1], [], []>} : vector<256x256xbf16>, vector<256x256xbf16>, vector<256x256xf32> -> vector<256x256xf32>
    %11 = vector.broadcast %8 : vector<1x256xf32> to vector<256x256xf32>
    %12 = arith.addf %10, %11 : vector<256x256xf32>
    %cst_8 = arith.constant 0.000000e+00 : f32
    %13 = vector.broadcast %cst_8 : f32 to vector<256x256xf32>
    %14 = arith.maximumf %12, %13 : vector<256x256xf32>
    %c272 = arith.constant 272 : index
    %c0_9 = arith.constant 0 : index
    %15 = vector.load %arg2[%c272, %c0_9] : memref<656x256xbf16, #tpu.memory_space<vmem>>, vector<256x256xbf16>
    %c2 = arith.constant 2 : index
    %c0_10 = arith.constant 0 : index
    %16 = vector.load %arg3[%c2, %c0_10] : memref<8x256xf32, #tpu.memory_space<vmem>>, vector<1x256xf32>
    %17 = arith.truncf %14 : vector<256x256xf32> to vector<256x256xbf16>
    %cst_11 = arith.constant dense<0.000000e+00> : vector<256x256xf32>
    %18 = tpu.matmul %17, %15, %cst_11 {dimension_numbers = #tpu.dot_dimension_numbers<[1], [0], [0], [1], [0, 0, 1, 1], [], []>} : vector<256x256xbf16>, vector<256x256xbf16>, vector<256x256xf32> -> vector<256x256xf32>
    %19 = vector.broadcast %16 : vector<1x256xf32> to vector<256x256xf32>
    %20 = arith.addf %18, %19 : vector<256x256xf32>
    %21 = vector.extract_strided_slice %20 {offsets = [0, 0], sizes = [256, 128], strides = [1, 1]} : vector<256x256xf32> to vector<256x128xf32>
    %22 = vector.extract_strided_slice %20 {offsets = [0, 128], sizes = [256, 128], strides = [1, 1]} : vector<256x256xf32> to vector<256x128xf32>
    %cst_12 = arith.constant 0.000000e+00 : f32
    %23 = vector.broadcast %cst_12 : f32 to vector<256x128xf32>
    %24 = arith.maximumf %22, %23 : vector<256x128xf32>
    %c528 = arith.constant 528 : index
    %c0_13 = arith.constant 0 : index
    %25 = vector.load %arg2[%c528, %c0_13] : memref<656x256xbf16, #tpu.memory_space<vmem>>, vector<128x128xbf16>
    %c3 = arith.constant 3 : index
    %c0_14 = arith.constant 0 : index
    %26 = vector.load %arg3[%c3, %c0_14] : memref<8x256xf32, #tpu.memory_space<vmem>>, vector<1x128xf32>
    %27 = arith.truncf %24 : vector<256x128xf32> to vector<256x128xbf16>
    %cst_15 = arith.constant dense<0.000000e+00> : vector<256x128xf32>
    %28 = tpu.matmul %27, %25, %cst_15 {dimension_numbers = #tpu.dot_dimension_numbers<[1], [0], [0], [1], [0, 0, 1, 1], [], []>} : vector<256x128xbf16>, vector<128x128xbf16>, vector<256x128xf32> -> vector<256x128xf32>
    %29 = vector.broadcast %26 : vector<1x128xf32> to vector<256x128xf32>
    %30 = arith.addf %28, %29 : vector<256x128xf32>
    %cst_16 = arith.constant dense<0xFF800000> : vector<256xf32>
    %31 = vector.multi_reduction <maximumf>, %21, %cst_16 [1] : vector<256x128xf32> to vector<256xf32>
    %32 = vector.shape_cast %31 : vector<256xf32> to vector<256x1xf32>
    %33 = vector.broadcast %32 : vector<256x1xf32> to vector<256x128xf32>
    %34 = arith.subf %21, %33 : vector<256x128xf32>
    %35 = math.exp %34 : vector<256x128xf32>
    %36 = arith.mulf %35, %30 : vector<256x128xf32>
    %cst_17 = arith.constant dense<0.000000e+00> : vector<256xf32>
    %37 = vector.multi_reduction <add>, %36, %cst_17 [1] : vector<256x128xf32> to vector<256xf32>
    %38 = vector.shape_cast %37 : vector<256xf32> to vector<256x1xf32>
    %cst_18 = arith.constant dense<0.000000e+00> : vector<256xf32>
    %39 = vector.multi_reduction <add>, %35, %cst_18 [1] : vector<256x128xf32> to vector<256xf32>
    %40 = vector.shape_cast %39 : vector<256xf32> to vector<256x1xf32>
    %41 = tpu.reciprocal %40 : vector<256x1xf32> -> vector<256x1xf32>
    %42 = arith.mulf %38, %41 : vector<256x1xf32>
    %c0_19 = arith.constant 0 : index
    %c0_20 = arith.constant 0 : index
    %43 = vector.load %arg4[%c0_19, %c0_20] : memref<256x1xf32, #tpu.memory_space<vmem>>, vector<256x1xf32>
    tpu.vector_store %arg4[%c0_19, %c0_20], %42 {strides = array<i32>} : memref<256x1xf32, #tpu.memory_space<vmem>>, vector<256x1xf32>,
    return
  }
  func.func @transform_0(%arg0: i32) -> (i32, i32) {
    %c0_i32 = arith.constant 0 : i32
    %c0_i32_0 = arith.constant 0 : i32
    return %arg0, %c0_i32 : i32, i32
  }
  func.func @transform_1(%arg0: i32) -> (i32, i32) {
    %c0_i32 = arith.constant 0 : i32
    %c0_i32_0 = arith.constant 0 : i32
    %c0_i32_1 = arith.constant 0 : i32
    return %c0_i32, %c0_i32_0 : i32, i32
  }
  func.func @transform_2(%arg0: i32) -> (i32, i32) {
    %c0_i32 = arith.constant 0 : i32
    %c0_i32_0 = arith.constant 0 : i32
    %c0_i32_1 = arith.constant 0 : i32
    return %c0_i32, %c0_i32_0 : i32, i32
  }
  func.func @transform_3(%arg0: i32) -> (i32, i32) {
    %c0_i32 = arith.constant 0 : i32
    %c0_i32_0 = arith.constant 0 : i32
    return %arg0, %c0_i32 : i32, i32
  }
}

</mosaic_0001>

<bundles_post_ra>
// kernel: moe_forward.1
= control target key start
LH: loop header
LB: loop body
LE: loop exit
PB: predicated region body
PF: predicated region fallthrough
CT: control target
= control target key end

     0   :  { %8 = vsyncpa [#allocation3], 0  ;;  %s2685_s12 = smov 0   ;;  %s3459_s0 = inlined_call_operand.vmem [shape: f32[512,16], index: 0, kind: input, shape index: {}]   ;;  %s3460_s1 = inlined_call_operand.hbm [shape: bf16[656,256], index: 1, kind: input, shape index: {}]   ;;  %s3461_s2 = inlined_call_operand.vmem [shape: f32[8,256], index: 2, kind: input, shape index: {}]   ;;  %s3462_s3 = inlined_call_operand.vmem [shape: f32[512,1], index: 3, kind: output, shape index: {}]  }
   0x1 LB: > { %s2187_s13 = sadd.s32 4294967295, %s2659_s12   ;;  %p2189_p0 = scmp.ge.s32.totalorder %s2659_s12, 1  ;;  %s2659_s12 = sphi %s2685_s12, %s14_s12  }
   0x2   : > { %p113_p1 = scmp.lt.s32.totalorder %s2659_s12, 3  ;;  %s2661_s14 = smov [#allocation2]  }
   0x3   : > { %s125_s15 = sshll.u32 %s2661_s14, 4  ;;  %p2699_p3 = scmp.eq.s32.totalorder %s2187_s13, 0  ;;  %s126_s15 = int_to_ptr.vmem [resolvable:$true] %s125_s15 }
   0x4   : > { %p2693_p2 = pnand %p2189_p0, %p113_p1  ;;  %s2621_s21 = scalar_lea.hbm %s3460_s1, 10496 }
   0x5   : > { %s3467_s17 = scalar_select %p2699_p3, 1, 0 }
   0x6   : > { %s3466_s16 = scalar_select %p2693_p2, 1, 0 }
   0x7   : > { %p2368_p4 = pneg %p2693_p2  ;;  %p2622_p6 = scmp.ne.s32.totalorder %s3460_s1, %s2621_s21 }
   0x8   : > { %p2628_p10 = scmp.lt.u32.totalorder %s2621_s21, %s3460_s1 }
   0x9   : > { %p2707_p5 = pnand %p2699_p3, %p2368_p4 }
   0xb   : > { %p2623_p7 = pneg %p2707_p5 }
   0xd   : > { %p2624_p8 = pnand %p2623_p7, %p2622_p6 }
   0xf   : > { %p2625_p9 = pneg %p2624_p8 }
  0x11   : > { %p2630_p11 = pnand %p2628_p10, %p2625_p9 }
  0x13   : > { %2633 = shalt.err (!%p2630_p11)
}
  0x14   : > { %s2634_s26 = scalar_lea.vmem %s126_s15, 10496  ;;  %p2642_p1 = scmp.lt.s32.totalorder %s126_s15, %s126_s15 }
  0x15   : > { %p2635_p12 = scmp.ne.s32.totalorder %s126_s15, %s2634_s26  ;;  %p2643_p4 = scmp.lt.s32.totalorder %s2634_s26, %s2634_s26 }
  0x17   : > { %p2637_p13 = pnand %p2635_p12, %p2623_p7  ;;  %p2644_p3 = por %p2643_p4, %p2642_p1 }
  0x19   : > { %p2638_p0 = pneg %p2637_p13 }
  0x1b   : > { %p2645_p2 = pnand %p2644_p3, %p2638_p0 }
  0x1d   : > { %2648 = shalt.err (!%p2645_p2)
}
  0x1e   : > { %s2662_s27 = smov 128   ;;  %s2663_s28 = smov 8  }
  0x1f   : > { %2371 = dma.hbm_to_vmem [thread:$0]  (!%p2707_p5), %s3460_s1, 10496, %s126_s15, [#allocation3], %s2662_s27, %s2662_s27, %s2663_s28  }
  0x20   : > { %p3469_p6 = scmp.ne.s32.totalorder %s3466_s16, 0 }
  0x21   : > { %p3470_p8 = scmp.ne.s32.totalorder (!%p3469_p6), %s3467_s17, 0 }
  0x22   : > { %153 = sbr.rel (%p3469_p6) target bundleno = 1202 (0x4b2), region = 32 }
  0x29   : > { %2654 = dma.done.wait (%p3470_p8), [#allocation3], 10496  }
  0x2a   : > { %2656 = vsyncadd (%p3470_p8), [#allocation3], 4294956800  ;;  %s2194_s4 = sshll.u32 %s2187_s13, 5  ;;  %v2664_v0 = vmov 0   ;;  %v2386_v1 = vld [vmem:[#allocation2 + $0x4] ss:$8 sps:$4 sm:$0xff]  }
  0x2b   : > { %343 = vmatprep.mubr.bf16.mxu0 %v2664_v0  ;;  %p178_p2 = scmp.lt.s32.totalorder %s2194_s4, 63  ;;  %v2388_v2 = vld [vmem:[#allocation2] ss:$8 sps:$4 sm:$0xff]   ;;  %311 = vmatprep.subr.bf16.mxu0 %v2386_v1  ;;  %vm262_vm0 = vcmask 130048   ;;  %v2389_v9 = vld [vmem:[#allocation2 + $0x14] ss:$8 sps:$4 sm:$0xff]  }
  0x2c   : > { %312 = vmatpush1.bf16.msra.mxu0 %v2388_v2  ;;  %v2391_v10 = vld [vmem:[#allocation2 + $0x10] ss:$8 sps:$4 sm:$0xff]   ;;  %741 = vmatprep.subr.bf16.mxu1 %v2389_v9  ;;  %v2392_v12 = vld [vmem:[#allocation2 + $0x24] ss:$8 sps:$4 sm:$0xff]   ;;  %v2394_v14 = vld [vmem:[#allocation2 + $0x20] ss:$8 sps:$4 sm:$0xff]  }
  0x2d   : > { %s3472_s4 = smov (!%p178_p2, %s2194_s4), 63  ;;  %742 = vmatpush1.bf16.msra.mxu1 %v2391_v10  ;;  %v2395_v15 = vld [vmem:[#allocation2 + $0x34] ss:$8 sps:$4 sm:$0xff]   ;;  %v2397_v17 = vld [vmem:[#allocation2 + $0x30] ss:$8 sps:$4 sm:$0xff]   ;;  %vm2086_vm1 = vcmask 7168  }
  0x2e   : > { %s2195_s5 = sshll.u32 %s3472_s4, 3  ;;  %743 = vmatprep.subr.bf16.mxu1 %v2392_v12  ;;  %v2398_v18 = vld [vmem:[#allocation2 + $0x44] ss:$8 sps:$4 sm:$0xff]   ;;  %v2400_v21 = vld [vmem:[#allocation2 + $0x40] ss:$8 sps:$4 sm:$0xff]  }
  0x2f   : > { %s2744_s8 = scalar_lea.vmem %s3459_s0, %s2195_s5  ;;  %v2401_v22 = vld [vmem:[#allocation2 + $0x54] ss:$8 sps:$4 sm:$0xff]   ;;  %v2403_v24 = vld [vmem:[#allocation2 + $0x50] ss:$8 sps:$4 sm:$0xff]   ;;  %v2404_v25 = vld [vmem:[#allocation2 + $0x64] ss:$8 sps:$4 sm:$0xff]   ;;  %s3346_s20 = scalar_lea.vmem %s3462_s3, %s2195_s5 }
  0x30   : > { %v190_v3 = vld [vmem:[%s2744_s8] sm:$0xff]  ;;  %v191_v4 = vld [vmem:[%s2744_s8 + $0x8] sm:$0xff]  ;;  %v192_v6 = vld [vmem:[%s2744_s8 + $0x10] sm:$0xff] }
  0x31   : > { %v225_v5 = vpack.c.bf16 %v191_v4, %v190_v3  ;;  %v193_v7 = vld [vmem:[%s2744_s8 + $0x18] sm:$0xff]  ;;  %v194_v11 = vld [vmem:[%s2744_s8 + $0x20] sm:$0xff]  ;;  %v195_v13 = vld [vmem:[%s2744_s8 + $0x28] sm:$0xff]  ;;  %744 = vmatpush1.bf16.msra.mxu1 %v2394_v14 }
  0x32   : > { %v226_v8 = vpack.c.bf16 %v193_v7, %v192_v6  ;;  %v227_v16 = vpack.c.bf16 %v195_v13, %v194_v11  ;;  %745 = vmatprep.subr.bf16.mxu1 %v2395_v15  ;;  %v196_v19 = vld [vmem:[%s2744_s8 + $0x30] sm:$0xff]  ;;  %v197_v20 = vld [vmem:[%s2744_s8 + $0x38] sm:$0xff]  ;;  %v198_v26 = vld [vmem:[%s2744_s8 + $0x40] sm:$0xff] }
  0x33   : > { %2200 = vmatmul.mubr.msk.bf16.vlgmr.msra.gmra.mrb[0].mxu0 %vm262_vm0, %v225_v5  ;;  %v228_v23 = vpack.c.bf16 %v197_v20, %v196_v19  ;;  %v199_v27 = vld [vmem:[%s2744_s8 + $0x48] sm:$0xff]  ;;  %v2407_v29 = vld [vmem:[#allocation2 + $0x74] ss:$8 sps:$4 sm:$0xff]   ;;  %v2409_v30 = vld [vmem:[#allocation2 + $0x70] ss:$8 sps:$4 sm:$0xff]  }
  0x34   : > { %353 = vmatprep.mubr.bf16.mxu0 %v2664_v0  ;;  %v2406_v28 = vld [vmem:[#allocation2 + $0x60] ss:$8 sps:$4 sm:$0xff]   ;;  %v229_v31 = vpack.c.bf16 %v199_v27, %v198_v26  ;;  %v2410_v32 = vld [vmem:[#allocation2 + $0x84] ss:$8 sps:$4 sm:$0xff]   ;;  %v200_v33 = vld [vmem:[%s2744_s8 + $0x50] sm:$0xff] }
  0x35   : > { %746 = vmatpush1.bf16.msra.mxu1 %v2397_v17  ;;  %v201_v34 = vld [vmem:[%s2744_s8 + $0x58] sm:$0xff]  ;;  %v2412_v35 = vld [vmem:[#allocation2 + $0x80] ss:$8 sps:$4 sm:$0xff]   ;;  %v2416_v39 = vld [vmem:[#allocation2 + $0xa4] ss:$8 sps:$4 sm:$0xff]  }
  0x36   : > { %747 = vmatprep.subr.bf16.mxu1 %v2398_v18  ;;  %v2413_v36 = vld [vmem:[#allocation2 + $0x94] ss:$8 sps:$4 sm:$0xff]   ;;  %v2415_v37 = vld [vmem:[#allocation2 + $0x90] ss:$8 sps:$4 sm:$0xff]   ;;  %v230_v38 = vpack.c.bf16 %v201_v34, %v200_v33  ;;  %v202_v40 = vld [vmem:[%s2744_s8 + $0x60] sm:$0xff] }
  0x37   : > { %v203_v41 = vld [vmem:[%s2744_s8 + $0x68] sm:$0xff]  ;;  %v2419_v43 = vld [vmem:[#allocation2 + $0xb4] ss:$8 sps:$4 sm:$0xff]   ;;  %v2421_v45 = vld [vmem:[#allocation2 + $0xb0] ss:$8 sps:$4 sm:$0xff]  }
  0x38   : > { %v2418_v42 = vld [vmem:[#allocation2 + $0xa0] ss:$8 sps:$4 sm:$0xff]   ;;  %v231_v44 = vpack.c.bf16 %v203_v41, %v202_v40  ;;  %v2422_v46 = vld [vmem:[#allocation2 + $0xc4] ss:$8 sps:$4 sm:$0xff]   ;;  %v204_v47 = vld [vmem:[%s2744_s8 + $0x70] sm:$0xff] }
  0x39   : > { %748 = vmatpush1.bf16.msra.mxu1 %v2400_v21  ;;  %v205_v48 = vld [vmem:[%s2744_s8 + $0x78] sm:$0xff]  ;;  %v2424_v49 = vld [vmem:[#allocation2 + $0xc0] ss:$8 sps:$4 sm:$0xff]   ;;  %v2428_v53 = vld [vmem:[#allocation2 + $0xe4] ss:$8 sps:$4 sm:$0xff]  }
  0x3a   : > { %749 = vmatprep.subr.bf16.mxu1 %v2401_v22  ;;  %v2425_v50 = vld [vmem:[#allocation2 + $0xd4] ss:$8 sps:$4 sm:$0xff]   ;;  %v232_v51 = vpack.c.bf16 %v205_v48, %v204_v47  ;;  %v2427_v52 = vld [vmem:[#allocation2 + $0xd0] ss:$8 sps:$4 sm:$0xff]   ;;  %v206_v54 = vld [vmem:[%s2744_s8 + $0x80] sm:$0xff] }
  0x3b   : > { %2201 = vmatmul.mubr.msk.bf16.gmra.mrb[4].mxu0 %vm262_vm0, %v226_v8  ;;  %v207_v55 = vld [vmem:[%s2744_s8 + $0x88] sm:$0xff]  ;;  %v208_v58 = vld [vmem:[%s2744_s8 + $0x90] sm:$0xff]  ;;  %v209_v59 = vld [vmem:[%s2744_s8 + $0x98] sm:$0xff] }
  0x3c   : > { %363 = vmatprep.mubr.bf16.mxu0 %v2664_v0  ;;  %v2430_v56 = vld [vmem:[#allocation2 + $0xe0] ss:$8 sps:$4 sm:$0xff]   ;;  %v233_v57 = vpack.c.bf16 %v207_v55, %v206_v54  ;;  %v234_v60 = vpack.c.bf16 %v209_v59, %v208_v58  ;;  %v212_v1 = vld [vmem:[%s2744_s8 + $0xb0] sm:$0xff]  ;;  %v213_v2 = vld [vmem:[%s2744_s8 + $0xb8] sm:$0xff] }
  0x3d   : > { %750 = vmatpush1.bf16.msra.mxu1 %v2403_v24  ;;  %v210_v61 = vld [vmem:[%s2744_s8 + $0xa0] sm:$0xff]  ;;  %v211_v62 = vld [vmem:[%s2744_s8 + $0xa8] sm:$0xff]  ;;  %v2431_v3 = vld [vmem:[#allocation2 + $0xf4] ss:$8 sps:$4 sm:$0xff]   ;;  %v236_v5 = vpack.c.bf16 %v213_v2, %v212_v1  ;;  %v242_v24 = vlaneseq }
  0x3e   : > { %751 = vmatprep.subr.bf16.mxu1 %v2404_v25  ;;  %v235_v63 = vpack.c.bf16 %v211_v62, %v210_v61  ;;  %v2433_v4 = vld [vmem:[#allocation2 + $0xf0] ss:$8 sps:$4 sm:$0xff]   ;;  %v2434_v6 = vld [vmem:[#allocation2 + $0x104] ss:$8 sps:$4 sm:$0xff]   ;;  %v2436_v7 = vld [vmem:[#allocation2 + $0x100] ss:$8 sps:$4 sm:$0xff]  }
  0x3f   : > { %v214_v8 = vld [vmem:[%s2744_s8 + $0xc0] sm:$0xff]  ;;  %v215_v9 = vld [vmem:[%s2744_s8 + $0xc8] sm:$0xff]  ;;  %v216_v11 = vld [vmem:[%s2744_s8 + $0xd0] sm:$0xff]  ;;  %v243_v27 = vshrl.u32 %v242_v24, 7 }
  0x40   : > { %v237_v10 = vpack.c.bf16 %v215_v9, %v214_v8  ;;  %v217_v12 = vld [vmem:[%s2744_s8 + $0xd8] sm:$0xff]  ;;  %v218_v14 = vld [vmem:[%s2744_s8 + $0xe0] sm:$0xff]  ;;  %v219_v15 = vld [vmem:[%s2744_s8 + $0xe8] sm:$0xff] }
  0x41   : > { %752 = vmatpush1.bf16.msra.mxu1 %v2406_v28  ;;  %v238_v13 = vpack.c.bf16 %v217_v12, %v216_v11  ;;  %v220_v17 = vld [vmem:[%s2744_s8 + $0xf0] sm:$0xff]  ;;  %v221_v18 = vld [vmem:[%s2744_s8 + $0xf8] sm:$0xff]  ;;  %v2440_v22 = vld [vmem:[#allocation2 + $0x120] ss:$8 sps:$4 sm:$0xff]  }
  0x42   : > { %753 = vmatprep.subr.bf16.mxu1 %v2407_v29  ;;  %v240_v19 = vpack.c.bf16 %v221_v18, %v220_v17  ;;  %v2437_v20 = vld [vmem:[#allocation2 + $0x110] ss:$8 sps:$4 sm:$0xff]   ;;  %v2439_v21 = vld [vmem:[#allocation2 + $0x114] ss:$8 sps:$4 sm:$0xff]   ;;  %v2814_v29 = vsub.s32 1, %v243_v27 }
  0x43   : > { %2202 = vmatmul.mubr.msk.bf16.gmra.mrb[8].mxu0 %vm262_vm0, %v227_v16  ;;  %v239_v16 = vpack.c.bf16 %v219_v15, %v218_v14  ;;  %1235 = vmatprep.subr.bf16.mxu0 %v2439_v21  ;;  %v2443_v25 = vld [vmem:[#allocation2 + $0x130] ss:$8 sps:$4 sm:$0xff]   ;;  %v2445_v26 = vld [vmem:[#allocation2 + $0x134] ss:$8 sps:$4 sm:$0xff]   ;;  %v2464_v11 = vld [vmem:[#allocation2 + $0x1a0] ss:$8 sps:$4 sm:$0xff]  }
  0x44   : > { %373 = vmatprep.mubr.bf16.mxu0 %v2664_v0  ;;  %1236 = vmatpush1.bf16.msra.mxu0 %v2437_v20  ;;  %v224_v28 = vld [vmem:[%s3461_s2] ss:$8 sm:$0x3]  ;;  %v2457_v48 = vld [vmem:[#allocation2 + $0x174] ss:$8 sps:$4 sm:$0xff]  }
  0x45   : > { %754 = vmatpush1.bf16.msra.mxu1 %v2409_v30  ;;  %v2446_v30 = vld [vmem:[#allocation2 + $0x140] ss:$8 sps:$4 sm:$0xff]   ;;  %v2820_v34 = vrot.slane %v224_v28, %v2814_v29  ;;  %v2463_v62 = vld [vmem:[#allocation2 + $0x194] ss:$8 sps:$4 sm:$0xff]   ;;  %v2461_v2 = vld [vmem:[#allocation2 + $0x190] ss:$8 sps:$4 sm:$0xff]  }
  0x46   : > { %755 = vmatprep.subr.bf16.mxu1 %v2410_v32  ;;  %v2472_v18 = vld [vmem:[#allocation2 + $0x1c4] ss:$8 sps:$4 sm:$0xff]  }
  0x49   : > { %756 = vmatpush1.bf16.msra.mxu1 %v2412_v35 }
  0x4a   : > { %757 = vmatprep.subr.bf16.mxu1 %v2413_v36  ;;  %v2449_v36 = vld [vmem:[#allocation2 + $0x150] ss:$8 sps:$4 sm:$0xff]  }
  0x4b   : > { %2203 = vmatmul.mubr.msk.bf16.gmra.mrb[12].mxu0 %vm262_vm0, %v228_v23  ;;  %v2442_v23 = vld [vmem:[#allocation2 + $0x124] ss:$8 sps:$4 sm:$0xff]  }
  0x4c   : > { %383 = vmatprep.mubr.bf16.mxu0 %v2664_v0  ;;  %1237 = vmatprep.subr.bf16.mxu0 %v2442_v23 }
  0x4d   : > { %758 = vmatpush1.bf16.msra.mxu1 %v2415_v37  ;;  %1238 = vmatpush1.bf16.msra.mxu0 %v2440_v22  ;;  %v2451_v37 = vld [vmem:[#allocation2 + $0x154] ss:$8 sps:$4 sm:$0xff]  }
  0x4e   : > { %759 = vmatprep.subr.bf16.mxu1 %v2416_v39  ;;  %1239 = vmatprep.subr.bf16.mxu0 %v2445_v26  ;;  %v2454_v39 = vld [vmem:[#allocation2 + $0x164] ss:$8 sps:$4 sm:$0xff]  }
  0x51   : > { %760 = vmatpush1.bf16.msra.mxu1 %v2418_v42  ;;  %1240 = vmatpush1.bf16.msra.mxu0 %v2443_v25  ;;  %v2470_v25 = vld [vmem:[#allocation2 + $0x1c0] ss:$8 sps:$4 sm:$0xff]  }
  0x52   : > { %761 = vmatprep.subr.bf16.mxu1 %v2419_v43 }
  0x53   : > { %2204 = vmatmul.mubr.msk.bf16.gmra.mrb[16].mxu0 %vm262_vm0, %v229_v31  ;;  %v2448_v31 = vld [vmem:[#allocation2 + $0x144] ss:$8 sps:$4 sm:$0xff]  }
  0x54   : > { %393 = vmatprep.mubr.bf16.mxu0 %v2664_v0  ;;  %1241 = vmatprep.subr.bf16.mxu0 %v2448_v31  ;;  %v2473_v31 = vld [vmem:[#allocation2 + $0x1d0] ss:$8 sps:$4 sm:$0xff]  }
  0x55   : > { %762 = vmatpush1.bf16.msra.mxu1 %v2421_v45  ;;  %1242 = vmatpush1.bf16.msra.mxu0 %v2446_v30 }
  0x56   : > { %763 = vmatprep.subr.bf16.mxu1 %v2422_v46  ;;  %1243 = vmatprep.subr.bf16.mxu0 %v2451_v37  ;;  %v2452_v46 = vld [vmem:[#allocation2 + $0x160] ss:$8 sps:$4 sm:$0xff]  }
  0x59   : > { %764 = vmatpush1.bf16.msra.mxu1 %v2424_v49  ;;  %1244 = vmatpush1.bf16.msra.mxu0 %v2449_v36 }
  0x5a   : > { %765 = vmatprep.subr.bf16.mxu1 %v2425_v50  ;;  %1245 = vmatprep.subr.bf16.mxu0 %v2454_v39 }
  0x5b   : > { %2205 = vmatmul.mubr.msk.bf16.gmra.mrb[20].mxu0 %vm262_vm0, %v230_v38 }
  0x5c   : > { %403 = vmatprep.mubr.bf16.mxu0 %v2664_v0 }
  0x5d   : > { %766 = vmatpush1.bf16.msra.mxu1 %v2427_v52  ;;  %1246 = vmatpush1.bf16.msra.mxu0 %v2452_v46 }
  0x5e   : > { %767 = vmatprep.subr.bf16.mxu1 %v2428_v53  ;;  %1247 = vmatprep.subr.bf16.mxu0 %v2457_v48  ;;  %v2460_v53 = vld [vmem:[#allocation2 + $0x184] ss:$8 sps:$4 sm:$0xff]  }
  0x61   : > { %768 = vmatpush1.bf16.msra.mxu1 %v2430_v56 }
  0x62   : > { %769 = vmatprep.subr.bf16.mxu1 %v2431_v3 }
  0x63   : > { %2206 = vmatmul.mubr.msk.bf16.gmra.mrb[24].mxu0 %vm262_vm0, %v231_v44 }
  0x64   : > { %413 = vmatprep.mubr.bf16.mxu0 %v2664_v0 }
  0x65   : > { %770 = vmatpush1.bf16.msra.mxu1 %v2433_v4  ;;  %v2466_v4 = vld [vmem:[#allocation2 + $0x1a4] ss:$8 sps:$4 sm:$0xff]  }
  0x66   : > { %771 = vmatprep.subr.bf16.mxu1 %v2434_v6 }
  0x69   : > { %772 = vmatpush1.bf16.msra.mxu1 %v2436_v7 }
  0x6b   : > { %2207 = vmatmul.mubr.msk.bf16.gmra.mrb[28].mxu0 %vm262_vm0, %v232_v51  ;;  %v2455_v51 = vld [vmem:[#allocation2 + $0x170] ss:$8 sps:$4 sm:$0xff]  }
  0x6c   : > { %423 = vmatprep.mubr.bf16.mxu0 %v2664_v0  ;;  %1248 = vmatpush1.bf16.msra.mxu0 %v2455_v51 }
  0x6d   : > { %1249 = vmatprep.subr.bf16.mxu0 %v2460_v53 }
  0x73   : > { %2208 = vmatmul.mubr.msk.bf16.gmra.mrb[32].mxu0 %vm262_vm0, %v233_v57 }
  0x74   : > { %433 = vmatprep.mubr.bf16.mxu0 %v2664_v0 }
  0x7b   : > { %2209 = vmatmul.mubr.msk.bf16.gmra.mrb[36].mxu0 %vm262_vm0, %v234_v60  ;;  %v2458_v60 = vld [vmem:[#allocation2 + $0x180] ss:$8 sps:$4 sm:$0xff]  }
  0x7c   : > { %443 = vmatprep.mubr.bf16.mxu0 %v2664_v0  ;;  %1250 = vmatpush1.bf16.msra.mxu0 %v2458_v60 }
  0x7d   : > { %1251 = vmatprep.subr.bf16.mxu0 %v2463_v62 }
  0x80   : > { %1252 = vmatpush1.bf16.msra.mxu0 %v2461_v2 }
  0x81   : > { %1253 = vmatprep.subr.bf16.mxu0 %v2466_v4 }
  0x83   : > { %2210 = vmatmul.mubr.msk.bf16.gmra.mrb[40].mxu0 %vm262_vm0, %v235_v63 }
  0x84   : > { %453 = vmatprep.mubr.bf16.mxu0 %v2664_v0  ;;  %1254 = vmatpush1.bf16.msra.mxu0 %v2464_v11 }
  0x8b   : > { %2211 = vmatmul.mubr.msk.bf16.gmra.mrb[44].mxu0 %vm262_vm0, %v236_v5 }
  0x8c   : > { %463 = vmatprep.mubr.bf16.mxu0 %v2664_v0 }
  0x93   : > { %2212 = vmatmul.mubr.msk.bf16.gmra.mrb[48].mxu0 %vm262_vm0, %v237_v10 }
  0x94   : > { %473 = vmatprep.mubr.bf16.mxu0 %v2664_v0 }
  0x9b   : > { %2213 = vmatmul.mubr.msk.bf16.gmra.mrb[52].mxu0 %vm262_vm0, %v238_v13  ;;  %v2469_v13 = vld [vmem:[#allocation2 + $0x1b4] ss:$8 sps:$4 sm:$0xff]  }
  0x9c   : > { %483 = vmatprep.mubr.bf16.mxu0 %v2664_v0  ;;  %1255 = vmatprep.subr.bf16.mxu0 %v2469_v13 }
  0xa3   : > { %2214 = vmatmul.mubr.msk.bf16.gmra.mrb[56].mxu0 %vm262_vm0, %v239_v16  ;;  %v2467_v16 = vld [vmem:[#allocation2 + $0x1b0] ss:$8 sps:$4 sm:$0xff]  }
  0xa4   : > { %493 = vmatprep.mubr.bf16.mxu0 %v2664_v0  ;;  %v2809_v0 = vsub.s32 0, %v243_v27  ;;  %1256 = vmatpush1.bf16.msra.mxu0 %v2467_v16  ;;  %v2475_v27 = vld [vmem:[#allocation2 + $0x1d4] ss:$8 sps:$4 sm:$0xff]  }
  0xa5   : > { %1257 = vmatprep.subr.bf16.mxu0 %v2472_v18 }
  0xa6   : > { %v2817_v32 = vrot.slane %v224_v28, %v2809_v0 }
  0xa8   : > { %1258 = vmatpush1.bf16.msra.mxu0 %v2470_v25 }
  0xa9   : > { %1259 = vmatprep.subr.bf16.mxu0 %v2475_v27 }
  0xab   : > { %2215 = vmatmul.mubr.msk.bf16.gmra.mrb[60].mxu0 %vm262_vm0, %v240_v19 }
  0xac   : > { %1260 = vmatpush1.bf16.msra.mxu0 %v2473_v31 }
 0x106   : > { %v345_v33 = vpop.f32.mrb[0].mxu0 }
 0x107   : > { %v347_v35 = vpop.f32.mrb[1].mxu0  ;;  %v346_v40 = vadd.f32 %v345_v33, %v2817_v32 }
 0x108   : > { %v349_v38 = vpop.f32.mrb[2].mxu0  ;;  %v348_v43 = vadd.f32 %v347_v35, %v2820_v34  ;;  %v2478_v35 = vld [vmem:[#allocation2 + $0x1e4] ss:$8 sps:$4 sm:$0xff]  }
 0x109   : > { %v350_v41 = vadd.f32 %v349_v38, %v2817_v32  ;;  %v351_v42 = vpop.f32.mrb[3].mxu0  ;;  %1261 = vmatprep.subr.bf16.mxu0 %v2478_v35 }
 0x10a   : > { %v352_v44 = vadd.f32 %v351_v42, %v2820_v34  ;;  %v2476_v42 = vld [vmem:[#allocation2 + $0x1e0] ss:$8 sps:$4 sm:$0xff]  }
 0x10b   : > { %v538_v45 = vpack.c.bf16 %v350_v41, %v346_v40  ;;  %1262 = vmatpush1.bf16.msra.mxu0 %v2476_v42 }
 0x10c   : > { %v539_v47 = vpack.c.bf16 %v352_v44, %v348_v43  ;;  %v2481_v44 = vld [vmem:[#allocation2 + $0x1f4] ss:$8 sps:$4 sm:$0xff]  }
 0x10d   : > { %1263 = vmatprep.subr.bf16.mxu0 %v2481_v44 }
 0x10e   : > { %v355_v49 = vpop.f32.mrb[4].mxu0  ;;  %773 = vmatprep.mubr.bf16.mxu1 %v539_v47  ;;  %v2479_v47 = vld [vmem:[#allocation2 + $0x1f0] ss:$8 sps:$4 sm:$0xff]  }
 0x10f   : > { %v357_v50 = vpop.f32.mrb[5].mxu0  ;;  %774 = vmatmul.mubr.bf16.vlgmr.msra.gmra.mrb[0].mxu1 %v538_v45  ;;  %v356_v54 = vadd.f32 %v355_v49, %v2817_v32  ;;  %1264 = vmatpush1.bf16.msra.mxu0 %v2479_v47 }
 0x110   : > { %v359_v52 = vpop.f32.mrb[6].mxu0  ;;  %v358_v57 = vadd.f32 %v357_v50, %v2820_v34 }
 0x111   : > { %v360_v55 = vadd.f32 %v359_v52, %v2817_v32  ;;  %v361_v56 = vpop.f32.mrb[7].mxu0 }
 0x112   : > { %v362_v58 = vadd.f32 %v361_v56, %v2820_v34 }
 0x113   : > { %v540_v59 = vpack.c.bf16 %v360_v55, %v356_v54 }
 0x114   : > { %v541_v61 = vpack.c.bf16 %v362_v58, %v358_v57 }
 0x116   : > { %v365_v63 = vpop.f32.mrb[8].mxu0  ;;  %783 = vmatprep.mubr.bf16.mxu1 %v541_v61 }
 0x117   : > { %v367_v1 = vpop.f32.mrb[9].mxu0  ;;  %784 = vmatmul.mubr.bf16.gmra.mrb[4].mxu1 %v540_v59  ;;  %v366_v5 = vadd.f32 %v365_v63, %v2817_v32 }
 0x118   : > { %v369_v3 = vpop.f32.mrb[10].mxu0  ;;  %v368_v8 = vadd.f32 %v367_v1, %v2820_v34 }
 0x119   : > { %v370_v6 = vadd.f32 %v369_v3, %v2817_v32  ;;  %v371_v7 = vpop.f32.mrb[11].mxu0 }
 0x11a   : > { %v372_v9 = vadd.f32 %v371_v7, %v2820_v34 }
 0x11b   : > { %v542_v10 = vpack.c.bf16 %v370_v6, %v366_v5 }
 0x11c   : > { %v543_v12 = vpack.c.bf16 %v372_v9, %v368_v8 }
 0x11e   : > { %v375_v14 = vpop.f32.mrb[12].mxu0  ;;  %793 = vmatprep.mubr.bf16.mxu1 %v543_v12 }
 0x11f   : > { %v377_v15 = vpop.f32.mrb[13].mxu0  ;;  %794 = vmatmul.mubr.bf16.gmra.mrb[8].mxu1 %v542_v10  ;;  %v376_v19 = vadd.f32 %v375_v14, %v2817_v32 }
 0x120   : > { %v379_v17 = vpop.f32.mrb[14].mxu0  ;;  %v378_v22 = vadd.f32 %v377_v15, %v2820_v34 }
 0x121   : > { %v380_v20 = vadd.f32 %v379_v17, %v2817_v32  ;;  %v381_v21 = vpop.f32.mrb[15].mxu0 }
 0x122   : > { %v382_v23 = vadd.f32 %v381_v21, %v2820_v34 }
 0x123   : > { %v544_v24 = vpack.c.bf16 %v380_v20, %v376_v19 }
 0x124   : > { %v545_v26 = vpack.c.bf16 %v382_v23, %v378_v22 }
 0x126   : > { %v385_v28 = vpop.f32.mrb[16].mxu0  ;;  %803 = vmatprep.mubr.bf16.mxu1 %v545_v26 }
 0x127   : > { %v387_v30 = vpop.f32.mrb[17].mxu0  ;;  %804 = vmatmul.mubr.bf16.gmra.mrb[12].mxu1 %v544_v24  ;;  %v386_v36 = vadd.f32 %v385_v28, %v2817_v32 }
 0x128   : > { %v389_v33 = vpop.f32.mrb[18].mxu0  ;;  %v388_v39 = vadd.f32 %v387_v30, %v2820_v34 }
 0x129   : > { %v390_v37 = vadd.f32 %v389_v33, %v2817_v32  ;;  %v391_v38 = vpop.f32.mrb[19].mxu0 }
 0x12a   : > { %v392_v40 = vadd.f32 %v391_v38, %v2820_v34 }
 0x12b   : > { %v546_v41 = vpack.c.bf16 %v390_v37, %v386_v36 }
 0x12c   : > { %v547_v43 = vpack.c.bf16 %v392_v40, %v388_v39 }
 0x12e   : > { %v395_v45 = vpop.f32.mrb[20].mxu0  ;;  %813 = vmatprep.mubr.bf16.mxu1 %v547_v43 }
 0x12f   : > { %v397_v46 = vpop.f32.mrb[21].mxu0  ;;  %814 = vmatmul.mubr.bf16.gmra.mrb[16].mxu1 %v546_v41  ;;  %v396_v49 = vadd.f32 %v395_v45, %v2817_v32 }
 0x130   : > { %v399_v48 = vpop.f32.mrb[22].mxu0  ;;  %v398_v52 = vadd.f32 %v397_v46, %v2820_v34 }
 0x131   : > { %v400_v50 = vadd.f32 %v399_v48, %v2817_v32  ;;  %v401_v51 = vpop.f32.mrb[23].mxu0 }
 0x132   : > { %v402_v53 = vadd.f32 %v401_v51, %v2820_v34 }
 0x133   : > { %v548_v54 = vpack.c.bf16 %v400_v50, %v396_v49 }
 0x134   : > { %v549_v55 = vpack.c.bf16 %v402_v53, %v398_v52 }
 0x136   : > { %v405_v56 = vpop.f32.mrb[24].mxu0  ;;  %823 = vmatprep.mubr.bf16.mxu1 %v549_v55 }
 0x137   : > { %v407_v57 = vpop.f32.mrb[25].mxu0  ;;  %824 = vmatmul.mubr.bf16.gmra.mrb[20].mxu1 %v548_v54  ;;  %v406_v59 = vadd.f32 %v405_v56, %v2817_v32 }
 0x138   : > { %v409_v58 = vpop.f32.mrb[26].mxu0  ;;  %v408_v62 = vadd.f32 %v407_v57, %v2820_v34 }
 0x139   : > { %v410_v60 = vadd.f32 %v409_v58, %v2817_v32  ;;  %v411_v61 = vpop.f32.mrb[27].mxu0  ;;  %v2484_v58 = vld [vmem:[#allocation2 + $0x204] ss:$8 sps:$4 sm:$0xff]  }
 0x13a   : > { %v412_v63 = vadd.f32 %v411_v61, %v2820_v34  ;;  %1265 = vmatprep.subr.bf16.mxu0 %v2484_v58 }
 0x13b   : > { %v550_v1 = vpack.c.bf16 %v410_v60, %v406_v59  ;;  %v2482_v60 = vld [vmem:[#allocation2 + $0x200] ss:$8 sps:$4 sm:$0xff]  }
 0x13c   : > { %v551_v2 = vpack.c.bf16 %v412_v63, %v408_v62  ;;  %1266 = vmatpush1.bf16.msra.mxu0 %v2482_v60 }
 0x13e   : > { %v415_v3 = vpop.f32.mrb[28].mxu0  ;;  %833 = vmatprep.mubr.bf16.mxu1 %v551_v2 }
 0x13f   : > { %v417_v4 = vpop.f32.mrb[29].mxu0  ;;  %834 = vmatmul.mubr.bf16.gmra.mrb[24].mxu1 %v550_v1  ;;  %v416_v6 = vadd.f32 %v415_v3, %v2817_v32 }
 0x140   : > { %v419_v5 = vpop.f32.mrb[30].mxu0  ;;  %v418_v9 = vadd.f32 %v417_v4, %v2820_v34 }
 0x141   : > { %v420_v7 = vadd.f32 %v419_v5, %v2817_v32  ;;  %v421_v8 = vpop.f32.mrb[31].mxu0 }
 0x142   : > { %v422_v10 = vadd.f32 %v421_v8, %v2820_v34 }
 0x143   : > { %v552_v11 = vpack.c.bf16 %v420_v7, %v416_v6 }
 0x144   : > { %v553_v12 = vpack.c.bf16 %v422_v10, %v418_v9 }
 0x146   : > { %v425_v13 = vpop.f32.mrb[32].mxu0  ;;  %843 = vmatprep.mubr.bf16.mxu1 %v553_v12 }
 0x147   : > { %v427_v14 = vpop.f32.mrb[33].mxu0  ;;  %844 = vmatmul.mubr.bf16.gmra.mrb[28].mxu1 %v552_v11  ;;  %v426_v16 = vadd.f32 %v425_v13, %v2817_v32 }
 0x148   : > { %v429_v15 = vpop.f32.mrb[34].mxu0  ;;  %v428_v19 = vadd.f32 %v427_v14, %v2820_v34 }
 0x149   : > { %v430_v17 = vadd.f32 %v429_v15, %v2817_v32  ;;  %v431_v18 = vpop.f32.mrb[35].mxu0 }
 0x14a   : > { %v432_v20 = vadd.f32 %v431_v18, %v2820_v34 }
 0x14b   : > { %v554_v21 = vpack.c.bf16 %v430_v17, %v426_v16 }
 0x14c   : > { %v555_v22 = vpack.c.bf16 %v432_v20, %v428_v19 }
 0x14e   : > { %v435_v23 = vpop.f32.mrb[36].mxu0  ;;  %853 = vmatprep.mubr.bf16.mxu1 %v555_v22 }
 0x14f   : > { %v437_v24 = vpop.f32.mrb[37].mxu0  ;;  %854 = vmatmul.mubr.bf16.gmra.mrb[32].mxu1 %v554_v21  ;;  %v436_v26 = vadd.f32 %v435_v23, %v2817_v32 }
 0x150   : > { %v439_v25 = vpop.f32.mrb[38].mxu0  ;;  %v438_v30 = vadd.f32 %v437_v24, %v2820_v34 }
 0x151   : > { %v440_v27 = vadd.f32 %v439_v25, %v2817_v32  ;;  %v441_v28 = vpop.f32.mrb[39].mxu0 }
 0x152   : > { %v442_v31 = vadd.f32 %v441_v28, %v2820_v34 }
 0x153   : > { %v556_v33 = vpack.c.bf16 %v440_v27, %v436_v26 }
 0x154   : > { %v557_v35 = vpack.c.bf16 %v442_v31, %v438_v30 }
 0x156   : > { %v445_v36 = vpop.f32.mrb[40].mxu0  ;;  %863 = vmatprep.mubr.bf16.mxu1 %v557_v35 }
 0x157   : > { %v447_v37 = vpop.f32.mrb[41].mxu0  ;;  %864 = vmatmul.mubr.bf16.gmra.mrb[36].mxu1 %v556_v33  ;;  %v446_v39 = vadd.f32 %v445_v36, %v2817_v32 }
 0x158   : > { %v449_v38 = vpop.f32.mrb[42].mxu0  ;;  %v448_v42 = vadd.f32 %v447_v37, %v2820_v34 }
 0x159   : > { %v450_v40 = vadd.f32 %v449_v38, %v2817_v32  ;;  %v451_v41 = vpop.f32.mrb[43].mxu0  ;;  %v2216_v38 = vld [vmem:[%s3461_s2 + $0x1] ss:$8 sm:$0x3] }
 0x15a   : > { %v452_v43 = vadd.f32 %v451_v41, %v2820_v34 }
 0x15b   : > { %v558_v44 = vpack.c.bf16 %v450_v40, %v446_v39  ;;  %v2890_v39 = vrot.slane %v2216_v38, %v2809_v0  ;;  %v2893_v40 = vrot.slane %v2216_v38, %v2814_v29 }
 0x15c   : > { %v559_v45 = vpack.c.bf16 %v452_v43, %v448_v42 }
 0x15e   : > { %v455_v46 = vpop.f32.mrb[44].mxu0  ;;  %873 = vmatprep.mubr.bf16.mxu1 %v559_v45 }
 0x15f   : > { %v457_v47 = vpop.f32.mrb[45].mxu0  ;;  %874 = vmatmul.mubr.bf16.gmra.mrb[40].mxu1 %v558_v44  ;;  %v456_v49 = vadd.f32 %v455_v46, %v2817_v32  ;;  %v2485_v46 = vld [vmem:[#allocation2 + $0x210] ss:$8 sps:$4 sm:$0xff]  }
 0x160   : > { %v459_v48 = vpop.f32.mrb[46].mxu0  ;;  %v458_v52 = vadd.f32 %v457_v47, %v2820_v34  ;;  %v2486_v47 = vld [vmem:[#allocation2 + $0x220] ss:$8 sps:$4 sm:$0xff]   ;;  %2316 = vmatprep.subr.bf16.mxu1 %v2485_v46 }
 0x161   : > { %v460_v50 = vadd.f32 %v459_v48, %v2817_v32  ;;  %v461_v51 = vpop.f32.mrb[47].mxu0  ;;  %2317 = vmatpush3.bf16.msra.mxu1 %v2485_v46 }
 0x162   : > { %v462_v53 = vadd.f32 %v461_v51, %v2820_v34  ;;  %2318 = vmatprep.subr.bf16.mxu1 %v2486_v47 }
 0x163   : > { %v560_v54 = vpack.c.bf16 %v460_v50, %v456_v49 }
 0x164   : > { %v561_v55 = vpack.c.bf16 %v462_v53, %v458_v52 }
 0x165   : > { %2319 = vmatpush3.bf16.msra.mxu1 %v2486_v47 }
 0x166   : > { %v465_v56 = vpop.f32.mrb[48].mxu0  ;;  %883 = vmatprep.mubr.bf16.mxu1 %v561_v55 }
 0x167   : > { %v467_v57 = vpop.f32.mrb[49].mxu0  ;;  %884 = vmatmul.mubr.bf16.gmra.mrb[44].mxu1 %v560_v54  ;;  %v466_v61 = vadd.f32 %v465_v56, %v2817_v32  ;;  %v2487_v54 = vld [vmem:[#allocation2 + $0x230] ss:$8 sps:$4 sm:$0xff]  }
 0x168   : > { %v469_v59 = vpop.f32.mrb[50].mxu0  ;;  %v468_v1 = vadd.f32 %v467_v57, %v2820_v34  ;;  %2320 = vmatprep.subr.bf16.mxu1 %v2487_v54 }
 0x169   : > { %v470_v62 = vadd.f32 %v469_v59, %v2817_v32  ;;  %v471_v63 = vpop.f32.mrb[51].mxu0  ;;  %2321 = vmatpush3.bf16.msra.mxu1 %v2487_v54 }
 0x16a   : > { %v472_v2 = vadd.f32 %v471_v63, %v2820_v34  ;;  %v2488_v63 = vld [vmem:[#allocation2 + $0x240] ss:$8 sps:$4 sm:$0xff]  }
 0x16b   : > { %v562_v3 = vpack.c.bf16 %v470_v62, %v466_v61  ;;  %2322 = vmatprep.subr.bf16.mxu1 %v2488_v63 }
 0x16c   : > { %v563_v4 = vpack.c.bf16 %v472_v2, %v468_v1 }
 0x16d   : > { %2323 = vmatpush3.bf16.msra.mxu1 %v2488_v63 }
 0x16e   : > { %v475_v5 = vpop.f32.mrb[52].mxu0  ;;  %893 = vmatprep.mubr.bf16.mxu1 %v563_v4 }
 0x16f   : > { %v477_v6 = vpop.f32.mrb[53].mxu0  ;;  %894 = vmatmul.mubr.bf16.gmra.mrb[48].mxu1 %v562_v3  ;;  %v476_v8 = vadd.f32 %v475_v5, %v2817_v32 }
 0x170   : > { %v479_v7 = vpop.f32.mrb[54].mxu0  ;;  %v478_v11 = vadd.f32 %v477_v6, %v2820_v34 }
 0x171   : > { %v480_v9 = vadd.f32 %v479_v7, %v2817_v32  ;;  %v481_v10 = vpop.f32.mrb[55].mxu0  ;;  %v2489_v7 = vld [vmem:[#allocation2 + $0x250] ss:$8 sps:$4 sm:$0xff]  }
 0x172   : > { %v482_v12 = vadd.f32 %v481_v10, %v2820_v34  ;;  %2324 = vmatprep.subr.bf16.mxu1 %v2489_v7 }
 0x173   : > { %v564_v13 = vpack.c.bf16 %v480_v9, %v476_v8  ;;  %2325 = vmatpush3.bf16.msra.mxu1 %v2489_v7 }
 0x174   : > { %v565_v14 = vpack.c.bf16 %v482_v12, %v478_v11 }
 0x176   : > { %v485_v15 = vpop.f32.mrb[56].mxu0  ;;  %903 = vmatprep.mubr.bf16.mxu1 %v565_v14 }
 0x177   : > { %v487_v16 = vpop.f32.mrb[57].mxu0  ;;  %904 = vmatmul.mubr.bf16.gmra.mrb[52].mxu1 %v564_v13  ;;  %v486_v18 = vadd.f32 %v485_v15, %v2817_v32 }
 0x178   : > { %v489_v17 = vpop.f32.mrb[58].mxu0  ;;  %v488_v21 = vadd.f32 %v487_v16, %v2820_v34 }
 0x179   : > { %v490_v19 = vadd.f32 %v489_v17, %v2817_v32  ;;  %v491_v20 = vpop.f32.mrb[59].mxu0 }
 0x17a   : > { %v492_v22 = vadd.f32 %v491_v20, %v2820_v34 }
 0x17b   : > { %v566_v23 = vpack.c.bf16 %v490_v19, %v486_v18 }
 0x17c   : > { %v567_v24 = vpack.c.bf16 %v492_v22, %v488_v21 }
 0x17e   : > { %v495_v25 = vpop.f32.mrb[60].mxu0  ;;  %913 = vmatprep.mubr.bf16.mxu1 %v567_v24 }
 0x17f   : > { %v497_v26 = vpop.f32.mrb[61].mxu0  ;;  %914 = vmatmul.mubr.bf16.gmra.mrb[56].mxu1 %v566_v23  ;;  %v496_v28 = vadd.f32 %v495_v25, %v2817_v32 }
 0x180   : > { %v499_v27 = vpop.f32.mrb[62].mxu0  ;;  %v498_v33 = vadd.f32 %v497_v26, %v2820_v34 }
 0x181   : > { %v500_v30 = vadd.f32 %v499_v27, %v2817_v32  ;;  %v501_v31 = vpop.f32.mrb[63].mxu0 }
 0x182   : > { %v502_v35 = vadd.f32 %v501_v31, %v2820_v34 }
 0x183   : > { %v568_v36 = vpack.c.bf16 %v500_v30, %v496_v28 }
 0x184   : > { %v569_v37 = vpack.c.bf16 %v502_v35, %v498_v33 }
 0x186   : > { %923 = vmatprep.mubr.bf16.mxu1 %v569_v37 }
 0x187   : > { %924 = vmatmul.mubr.bf16.gmra.mrb[60].mxu1 %v568_v36 }
 0x1e2   : > { %v775_v32 = vpop.f32.mrb[0].mxu1 }
 0x1e3   : > { %v776_v41 = vadd.f32 %v775_v32, %v2890_v39  ;;  %v777_v42 = vpop.f32.mrb[1].mxu1 }
 0x1e4   : > { %v778_v34 = vadd.f32 %v777_v42, %v2893_v40  ;;  %v779_v43 = vpop.f32.mrb[2].mxu1 }
 0x1e5   : > { %v780_v44 = vadd.f32 %v779_v43, %v2890_v39  ;;  %v781_v45 = vpop.f32.mrb[3].mxu1  ;;  %v934_v49 = vmax.f32 %v776_v41, 0.0 }
 0x1e6   : > { %v782_v48 = vadd.f32 %v781_v45, %v2893_v40  ;;  %v935_v51 = vmax.f32 %v778_v34, 0.0 }
 0x1e7   : > { %v936_v50 = vmax.f32 %v780_v44, 0.0 }
 0x1e8   : > { %v937_v52 = vmax.f32 %v782_v48, 0.0 }
 0x1e9   : > { %v1032_v53 = vpack.c.bf16 %v936_v50, %v934_v49 }
 0x1ea   : > { %v1033_v55 = vpack.c.bf16 %v937_v52, %v935_v51  ;;  %v785_v56 = vpop.f32.mrb[4].mxu1 }
 0x1eb   : > { %v786_v57 = vadd.f32 %v785_v56, %v2890_v39  ;;  %v787_v58 = vpop.f32.mrb[5].mxu1 }
 0x1ec   : > { %v788_v59 = vadd.f32 %v787_v58, %v2893_v40  ;;  %v789_v60 = vpop.f32.mrb[6].mxu1  ;;  %1267 = vmatprep.mubr.bf16.mxu0 %v1033_v55 }
 0x1ed   : > { %v790_v61 = vadd.f32 %v789_v60, %v2890_v39  ;;  %v791_v62 = vpop.f32.mrb[7].mxu1  ;;  %1268 = vmatmul.mubr.bf16.vlgmr.msra.gmra.mrb[64].mxu0 %v1032_v53  ;;  %v938_v2 = vmax.f32 %v786_v57, 0.0 }
 0x1ee   : > { %v792_v1 = vadd.f32 %v791_v62, %v2893_v40  ;;  %v939_v4 = vmax.f32 %v788_v59, 0.0 }
 0x1ef   : > { %v940_v3 = vmax.f32 %v790_v61, 0.0 }
 0x1f0   : > { %v941_v5 = vmax.f32 %v792_v1, 0.0 }
 0x1f1   : > { %v1034_v6 = vpack.c.bf16 %v940_v3, %v938_v2 }
 0x1f2   : > { %v1035_v8 = vpack.c.bf16 %v941_v5, %v939_v4  ;;  %v795_v9 = vpop.f32.mrb[8].mxu1 }
 0x1f3   : > { %v796_v10 = vadd.f32 %v795_v9, %v2890_v39  ;;  %v797_v11 = vpop.f32.mrb[9].mxu1 }
 0x1f4   : > { %v798_v12 = vadd.f32 %v797_v11, %v2893_v40  ;;  %v799_v13 = vpop.f32.mrb[10].mxu1  ;;  %1277 = vmatprep.mubr.bf16.mxu0 %v1035_v8 }
 0x1f5   : > { %v800_v14 = vadd.f32 %v799_v13, %v2890_v39  ;;  %v801_v15 = vpop.f32.mrb[11].mxu1  ;;  %1278 = vmatmul.mubr.bf16.gmra.mrb[68].mxu0 %v1034_v6  ;;  %v942_v17 = vmax.f32 %v796_v10, 0.0 }
 0x1f6   : > { %v802_v16 = vadd.f32 %v801_v15, %v2893_v40  ;;  %v943_v19 = vmax.f32 %v798_v12, 0.0 }
 0x1f7   : > { %v944_v18 = vmax.f32 %v800_v14, 0.0 }
 0x1f8   : > { %v945_v20 = vmax.f32 %v802_v16, 0.0 }
 0x1f9   : > { %v1036_v21 = vpack.c.bf16 %v944_v18, %v942_v17 }
 0x1fa   : > { %v1037_v22 = vpack.c.bf16 %v945_v20, %v943_v19  ;;  %v805_v23 = vpop.f32.mrb[12].mxu1 }
 0x1fb   : > { %v806_v24 = vadd.f32 %v805_v23, %v2890_v39  ;;  %v807_v25 = vpop.f32.mrb[13].mxu1 }
 0x1fc   : > { %v808_v26 = vadd.f32 %v807_v25, %v2893_v40  ;;  %v809_v27 = vpop.f32.mrb[14].mxu1  ;;  %1287 = vmatprep.mubr.bf16.mxu0 %v1037_v22 }
 0x1fd   : > { %v810_v28 = vadd.f32 %v809_v27, %v2890_v39  ;;  %v811_v30 = vpop.f32.mrb[15].mxu1  ;;  %1288 = vmatmul.mubr.bf16.gmra.mrb[72].mxu0 %v1036_v21  ;;  %v946_v33 = vmax.f32 %v806_v24, 0.0 }
 0x1fe   : > { %v812_v31 = vadd.f32 %v811_v30, %v2893_v40  ;;  %v947_v36 = vmax.f32 %v808_v26, 0.0 }
 0x1ff   : > { %v948_v35 = vmax.f32 %v810_v28, 0.0 }
 0x200   : > { %v949_v37 = vmax.f32 %v812_v31, 0.0 }
 0x201   : > { %v1038_v38 = vpack.c.bf16 %v948_v35, %v946_v33 }
 0x202   : > { %v1039_v32 = vpack.c.bf16 %v949_v37, %v947_v36  ;;  %v815_v41 = vpop.f32.mrb[16].mxu1 }
 0x203   : > { %v816_v42 = vadd.f32 %v815_v41, %v2890_v39  ;;  %v817_v34 = vpop.f32.mrb[17].mxu1 }
 0x204   : > { %v818_v43 = vadd.f32 %v817_v34, %v2893_v40  ;;  %v819_v44 = vpop.f32.mrb[18].mxu1  ;;  %1297 = vmatprep.mubr.bf16.mxu0 %v1039_v32 }
 0x205   : > { %v820_v45 = vadd.f32 %v819_v44, %v2890_v39  ;;  %v821_v46 = vpop.f32.mrb[19].mxu1  ;;  %1298 = vmatmul.mubr.bf16.gmra.mrb[76].mxu0 %v1038_v38  ;;  %v950_v48 = vmax.f32 %v816_v42, 0.0 }
 0x206   : > { %v822_v47 = vadd.f32 %v821_v46, %v2893_v40  ;;  %v951_v50 = vmax.f32 %v818_v43, 0.0 }
 0x207   : > { %v952_v49 = vmax.f32 %v820_v45, 0.0 }
 0x208   : > { %v953_v51 = vmax.f32 %v822_v47, 0.0 }
 0x209   : > { %v1040_v52 = vpack.c.bf16 %v952_v49, %v950_v48 }
 0x20a   : > { %v1041_v53 = vpack.c.bf16 %v953_v51, %v951_v50  ;;  %v825_v54 = vpop.f32.mrb[20].mxu1 }
 0x20b   : > { %v826_v55 = vadd.f32 %v825_v54, %v2890_v39  ;;  %v827_v56 = vpop.f32.mrb[21].mxu1 }
 0x20c   : > { %v828_v57 = vadd.f32 %v827_v56, %v2893_v40  ;;  %v829_v58 = vpop.f32.mrb[22].mxu1  ;;  %1307 = vmatprep.mubr.bf16.mxu0 %v1041_v53 }
 0x20d   : > { %v830_v59 = vadd.f32 %v829_v58, %v2890_v39  ;;  %v831_v60 = vpop.f32.mrb[23].mxu1  ;;  %1308 = vmatmul.mubr.bf16.gmra.mrb[80].mxu0 %v1040_v52  ;;  %v954_v62 = vmax.f32 %v826_v55, 0.0 }
 0x20e   : > { %v832_v61 = vadd.f32 %v831_v60, %v2893_v40  ;;  %v955_v1 = vmax.f32 %v828_v57, 0.0 }
 0x20f   : > { %v956_v63 = vmax.f32 %v830_v59, 0.0 }
 0x210   : > { %v957_v2 = vmax.f32 %v832_v61, 0.0 }
 0x211   : > { %v1042_v3 = vpack.c.bf16 %v956_v63, %v954_v62 }
 0x212   : > { %v1043_v4 = vpack.c.bf16 %v957_v2, %v955_v1  ;;  %v835_v5 = vpop.f32.mrb[24].mxu1 }
 0x213   : > { %v836_v6 = vadd.f32 %v835_v5, %v2890_v39  ;;  %v837_v7 = vpop.f32.mrb[25].mxu1 }
 0x214   : > { %v838_v8 = vadd.f32 %v837_v7, %v2893_v40  ;;  %v839_v9 = vpop.f32.mrb[26].mxu1  ;;  %1317 = vmatprep.mubr.bf16.mxu0 %v1043_v4 }
 0x215   : > { %v840_v10 = vadd.f32 %v839_v9, %v2890_v39  ;;  %v841_v11 = vpop.f32.mrb[27].mxu1  ;;  %1318 = vmatmul.mubr.bf16.gmra.mrb[84].mxu0 %v1042_v3  ;;  %v958_v13 = vmax.f32 %v836_v6, 0.0 }
 0x216   : > { %v842_v12 = vadd.f32 %v841_v11, %v2893_v40  ;;  %v959_v15 = vmax.f32 %v838_v8, 0.0 }
 0x217   : > { %v960_v14 = vmax.f32 %v840_v10, 0.0 }
 0x218   : > { %v961_v16 = vmax.f32 %v842_v12, 0.0 }
 0x219   : > { %v1044_v17 = vpack.c.bf16 %v960_v14, %v958_v13 }
 0x21a   : > { %v1045_v18 = vpack.c.bf16 %v961_v16, %v959_v15  ;;  %v845_v19 = vpop.f32.mrb[28].mxu1 }
 0x21b   : > { %v846_v20 = vadd.f32 %v845_v19, %v2890_v39  ;;  %v847_v21 = vpop.f32.mrb[29].mxu1 }
 0x21c   : > { %v848_v22 = vadd.f32 %v847_v21, %v2893_v40  ;;  %v849_v23 = vpop.f32.mrb[30].mxu1  ;;  %1327 = vmatprep.mubr.bf16.mxu0 %v1045_v18 }
 0x21d   : > { %v850_v24 = vadd.f32 %v849_v23, %v2890_v39  ;;  %v851_v25 = vpop.f32.mrb[31].mxu1  ;;  %1328 = vmatmul.mubr.bf16.gmra.mrb[88].mxu0 %v1044_v17  ;;  %v962_v27 = vmax.f32 %v846_v20, 0.0 }
 0x21e   : > { %v852_v26 = vadd.f32 %v851_v25, %v2893_v40  ;;  %v963_v30 = vmax.f32 %v848_v22, 0.0 }
 0x21f   : > { %v964_v28 = vmax.f32 %v850_v24, 0.0 }
 0x220   : > { %v965_v31 = vmax.f32 %v852_v26, 0.0 }
 0x221   : > { %v1046_v33 = vpack.c.bf16 %v964_v28, %v962_v27 }
 0x222   : > { %v1047_v35 = vpack.c.bf16 %v965_v31, %v963_v30  ;;  %v855_v36 = vpop.f32.mrb[32].mxu1 }
 0x223   : > { %v856_v37 = vadd.f32 %v855_v36, %v2890_v39  ;;  %v857_v38 = vpop.f32.mrb[33].mxu1 }
 0x224   : > { %v858_v32 = vadd.f32 %v857_v38, %v2893_v40  ;;  %v859_v41 = vpop.f32.mrb[34].mxu1  ;;  %1337 = vmatprep.mubr.bf16.mxu0 %v1047_v35 }
 0x225   : > { %v860_v42 = vadd.f32 %v859_v41, %v2890_v39  ;;  %v861_v34 = vpop.f32.mrb[35].mxu1  ;;  %1338 = vmatmul.mubr.bf16.gmra.mrb[92].mxu0 %v1046_v33  ;;  %v966_v44 = vmax.f32 %v856_v37, 0.0  ;;  %v2490_v37 = vld [vmem:[#allocation2 + $0x260] ss:$8 sps:$4 sm:$0xff]  }
 0x226   : > { %v862_v43 = vadd.f32 %v861_v34, %v2893_v40  ;;  %v967_v46 = vmax.f32 %v858_v32, 0.0  ;;  %2326 = vmatprep.subr.bf16.mxu1 %v2490_v37 }
 0x227   : > { %v968_v45 = vmax.f32 %v860_v42, 0.0  ;;  %2327 = vmatpush3.bf16.msra.mxu1 %v2490_v37 }
 0x228   : > { %v969_v47 = vmax.f32 %v862_v43, 0.0 }
 0x229   : > { %v1048_v48 = vpack.c.bf16 %v968_v45, %v966_v44  ;;  %v2491_v45 = vld [vmem:[#allocation2 + $0x270] ss:$8 sps:$4 sm:$0xff]  }
 0x22a   : > { %v1049_v49 = vpack.c.bf16 %v969_v47, %v967_v46  ;;  %v865_v50 = vpop.f32.mrb[36].mxu1  ;;  %2328 = vmatprep.subr.bf16.mxu1 %v2491_v45 }
 0x22b   : > { %v866_v51 = vadd.f32 %v865_v50, %v2890_v39  ;;  %v867_v52 = vpop.f32.mrb[37].mxu1  ;;  %2329 = vmatpush3.bf16.msra.mxu1 %v2491_v45 }
 0x22c   : > { %v868_v53 = vadd.f32 %v867_v52, %v2893_v40  ;;  %v869_v54 = vpop.f32.mrb[38].mxu1  ;;  %1347 = vmatprep.mubr.bf16.mxu0 %v1049_v49 }
 0x22d   : > { %v870_v55 = vadd.f32 %v869_v54, %v2890_v39  ;;  %v871_v56 = vpop.f32.mrb[39].mxu1  ;;  %1348 = vmatmul.mubr.bf16.gmra.mrb[96].mxu0 %v1048_v48  ;;  %v970_v58 = vmax.f32 %v866_v51, 0.0 }
 0x22e   : > { %v872_v57 = vadd.f32 %v871_v56, %v2893_v40  ;;  %v971_v60 = vmax.f32 %v868_v53, 0.0  ;;  %v2492_v53 = vld [vmem:[#allocation2 + $0x280] ss:$8 sps:$4 sm:$0xff]  }
 0x22f   : > { %v972_v59 = vmax.f32 %v870_v55, 0.0  ;;  %2330 = vmatprep.subr.bf16.mxu1 %v2492_v53 }
 0x230   : > { %v973_v61 = vmax.f32 %v872_v57, 0.0  ;;  %2331 = vmatpush3.bf16.msra.mxu1 %v2492_v53 }
 0x231   : > { %v1050_v62 = vpack.c.bf16 %v972_v59, %v970_v58 }
 0x232   : > { %v1051_v63 = vpack.c.bf16 %v973_v61, %v971_v60  ;;  %v875_v1 = vpop.f32.mrb[40].mxu1 }
 0x233   : > { %v876_v2 = vadd.f32 %v875_v1, %v2890_v39  ;;  %v877_v3 = vpop.f32.mrb[41].mxu1 }
 0x234   : > { %v878_v4 = vadd.f32 %v877_v3, %v2893_v40  ;;  %v879_v5 = vpop.f32.mrb[42].mxu1  ;;  %1357 = vmatprep.mubr.bf16.mxu0 %v1051_v63 }
 0x235   : > { %v880_v6 = vadd.f32 %v879_v5, %v2890_v39  ;;  %v881_v7 = vpop.f32.mrb[43].mxu1  ;;  %1358 = vmatmul.mubr.bf16.gmra.mrb[100].mxu0 %v1050_v62  ;;  %v974_v9 = vmax.f32 %v876_v2, 0.0 }
 0x236   : > { %v882_v8 = vadd.f32 %v881_v7, %v2893_v40  ;;  %v975_v11 = vmax.f32 %v878_v4, 0.0 }
 0x237   : > { %v976_v10 = vmax.f32 %v880_v6, 0.0 }
 0x238   : > { %v977_v12 = vmax.f32 %v882_v8, 0.0 }
 0x239   : > { %v1052_v13 = vpack.c.bf16 %v976_v10, %v974_v9 }
 0x23a   : > { %v1053_v14 = vpack.c.bf16 %v977_v12, %v975_v11  ;;  %v885_v15 = vpop.f32.mrb[44].mxu1 }
 0x23b   : > { %v886_v16 = vadd.f32 %v885_v15, %v2890_v39  ;;  %v887_v17 = vpop.f32.mrb[45].mxu1 }
 0x23c   : > { %v888_v18 = vadd.f32 %v887_v17, %v2893_v40  ;;  %v889_v19 = vpop.f32.mrb[46].mxu1  ;;  %1367 = vmatprep.mubr.bf16.mxu0 %v1053_v14 }
 0x23d   : > { %v890_v20 = vadd.f32 %v889_v19, %v2890_v39  ;;  %v891_v21 = vpop.f32.mrb[47].mxu1  ;;  %1368 = vmatmul.mubr.bf16.gmra.mrb[104].mxu0 %v1052_v13  ;;  %v978_v23 = vmax.f32 %v886_v16, 0.0 }
 0x23e   : > { %v892_v22 = vadd.f32 %v891_v21, %v2893_v40  ;;  %v979_v25 = vmax.f32 %v888_v18, 0.0 }
 0x23f   : > { %v980_v24 = vmax.f32 %v890_v20, 0.0 }
 0x240   : > { %v981_v26 = vmax.f32 %v892_v22, 0.0 }
 0x241   : > { %v1054_v27 = vpack.c.bf16 %v980_v24, %v978_v23 }
 0x242   : > { %v1055_v28 = vpack.c.bf16 %v981_v26, %v979_v25  ;;  %v895_v30 = vpop.f32.mrb[48].mxu1 }
 0x243   : > { %v896_v31 = vadd.f32 %v895_v30, %v2890_v39  ;;  %v897_v33 = vpop.f32.mrb[49].mxu1 }
 0x244   : > { %v898_v35 = vadd.f32 %v897_v33, %v2893_v40  ;;  %v899_v36 = vpop.f32.mrb[50].mxu1  ;;  %1377 = vmatprep.mubr.bf16.mxu0 %v1055_v28  ;;  %v2249_v28 = vld [vmem:[%s3461_s2 + $0x2] ss:$8 sm:$0x3] }
 0x245   : > { %v900_v38 = vadd.f32 %v899_v36, %v2890_v39  ;;  %v901_v32 = vpop.f32.mrb[51].mxu1  ;;  %1378 = vmatmul.mubr.bf16.gmra.mrb[108].mxu0 %v1054_v27  ;;  %v982_v42 = vmax.f32 %v896_v31, 0.0  ;;  %v2963_v30 = vrot.slane %v2249_v28, %v2809_v0 }
 0x246   : > { %v902_v41 = vadd.f32 %v901_v32, %v2893_v40  ;;  %v983_v43 = vmax.f32 %v898_v35, 0.0 }
 0x247   : > { %v984_v34 = vmax.f32 %v900_v38, 0.0 }
 0x248   : > { %v985_v44 = vmax.f32 %v902_v41, 0.0 }
 0x249   : > { %v1056_v46 = vpack.c.bf16 %v984_v34, %v982_v42 }
 0x24a   : > { %v1057_v47 = vpack.c.bf16 %v985_v44, %v983_v43  ;;  %v905_v48 = vpop.f32.mrb[52].mxu1 }
 0x24b   : > { %v906_v49 = vadd.f32 %v905_v48, %v2890_v39  ;;  %v907_v50 = vpop.f32.mrb[53].mxu1 }
 0x24c   : > { %v908_v51 = vadd.f32 %v907_v50, %v2893_v40  ;;  %v909_v52 = vpop.f32.mrb[54].mxu1  ;;  %1387 = vmatprep.mubr.bf16.mxu0 %v1057_v47 }
 0x24d   : > { %v910_v54 = vadd.f32 %v909_v52, %v2890_v39  ;;  %v911_v55 = vpop.f32.mrb[55].mxu1  ;;  %1388 = vmatmul.mubr.bf16.gmra.mrb[112].mxu0 %v1056_v46  ;;  %v986_v57 = vmax.f32 %v906_v49, 0.0 }
 0x24e   : > { %v912_v56 = vadd.f32 %v911_v55, %v2893_v40  ;;  %v987_v59 = vmax.f32 %v908_v51, 0.0 }
 0x24f   : > { %v988_v58 = vmax.f32 %v910_v54, 0.0 }
 0x250   : > { %v989_v60 = vmax.f32 %v912_v56, 0.0 }
 0x251   : > { %v1058_v61 = vpack.c.bf16 %v988_v58, %v986_v57 }
 0x252   : > { %v1059_v62 = vpack.c.bf16 %v989_v60, %v987_v59  ;;  %v915_v63 = vpop.f32.mrb[56].mxu1 }
 0x253   : > { %v916_v1 = vadd.f32 %v915_v63, %v2890_v39  ;;  %v917_v2 = vpop.f32.mrb[57].mxu1 }
 0x254   : > { %v918_v3 = vadd.f32 %v917_v2, %v2893_v40  ;;  %v919_v4 = vpop.f32.mrb[58].mxu1  ;;  %1397 = vmatprep.mubr.bf16.mxu0 %v1059_v62 }
 0x255   : > { %v920_v5 = vadd.f32 %v919_v4, %v2890_v39  ;;  %v921_v6 = vpop.f32.mrb[59].mxu1  ;;  %1398 = vmatmul.mubr.bf16.gmra.mrb[116].mxu0 %v1058_v61  ;;  %v990_v8 = vmax.f32 %v916_v1, 0.0 }
 0x256   : > { %v922_v7 = vadd.f32 %v921_v6, %v2893_v40  ;;  %v991_v10 = vmax.f32 %v918_v3, 0.0 }
 0x257   : > { %v992_v9 = vmax.f32 %v920_v5, 0.0 }
 0x258   : > { %v993_v11 = vmax.f32 %v922_v7, 0.0 }
 0x259   : > { %v1060_v12 = vpack.c.bf16 %v992_v9, %v990_v8 }
 0x25a   : > { %v1061_v13 = vpack.c.bf16 %v993_v11, %v991_v10  ;;  %v925_v14 = vpop.f32.mrb[60].mxu1 }
 0x25b   : > { %v926_v15 = vadd.f32 %v925_v14, %v2890_v39  ;;  %v927_v16 = vpop.f32.mrb[61].mxu1 }
 0x25c   : > { %v928_v17 = vadd.f32 %v927_v16, %v2893_v40  ;;  %v929_v18 = vpop.f32.mrb[62].mxu1  ;;  %1407 = vmatprep.mubr.bf16.mxu0 %v1061_v13 }
 0x25d   : > { %v930_v19 = vadd.f32 %v929_v18, %v2890_v39  ;;  %v931_v20 = vpop.f32.mrb[63].mxu1  ;;  %1408 = vmatmul.mubr.bf16.gmra.mrb[120].mxu0 %v1060_v12  ;;  %v994_v22 = vmax.f32 %v926_v15, 0.0  ;;  %v2966_v39 = vrot.slane %v2249_v28, %v2814_v29 }
 0x25e   : > { %v932_v21 = vadd.f32 %v931_v20, %v2893_v40  ;;  %v995_v24 = vmax.f32 %v928_v17, 0.0 }
 0x25f   : > { %v996_v23 = vmax.f32 %v930_v19, 0.0 }
 0x260   : > { %v997_v25 = vmax.f32 %v932_v21, 0.0 }
 0x261   : > { %v1062_v26 = vpack.c.bf16 %v996_v23, %v994_v22 }
 0x262   : > { %v1063_v27 = vpack.c.bf16 %v997_v25, %v995_v24 }
 0x264   : > { %1417 = vmatprep.mubr.bf16.mxu0 %v1063_v27 }
 0x265   : > { %1418 = vmatmul.mubr.bf16.gmra.mrb[124].mxu0 %v1062_v26 }
 0x2c0   : > { %v1269_v31 = vpop.f32.mrb[64].mxu0 }
 0x2c1   : > { %v2969_v40 = vadd.f32 %v1269_v31, %v2963_v30  ;;  %v1271_v33 = vpop.f32.mrb[65].mxu0 }
 0x2c2   : > { %v1272_v35 = vadd.f32 %v1271_v33, %v2966_v39  ;;  %v1273_v36 = vpop.f32.mrb[66].mxu0 }
 0x2c3   : > { %v1275_v37 = vpop.f32.mrb[67].mxu0  ;;  %1702 = vmax.xlane.f32.xlu0 %v2969_v40  ;;  %v2975_v32 = vadd.f32 %v1273_v36, %v2963_v30 }
 0x2c4   : > { %v1276_v38 = vadd.f32 %v1275_v37, %v2966_v39  ;;  %v1428_v0 = vmax.f32 %v1272_v35, 0.0 }
 0x2c6   : > { %v1429_v41 = vmax.f32 %v1276_v38, 0.0 }
 0x2c7   : > { %1704 = vmax.xlane.f32.xlu0 %v2975_v32 }
 0x2c8   : > { %v1477_v29 = vpack.c.bf16 %v1429_v41, %v1428_v0  ;;  %v1279_v42 = vpop.f32.mrb[68].mxu0 }
 0x2c9   : > { %v2979_v34 = vadd.f32 %v1279_v42, %v2963_v30  ;;  %v1281_v43 = vpop.f32.mrb[69].mxu0 }
 0x2ca   : > { %v1282_v44 = vadd.f32 %v1281_v43, %v2966_v39  ;;  %v1283_v45 = vpop.f32.mrb[70].mxu0  ;;  %2332 = vmatprep.mubr.bf16.mxu1 %v1477_v29 }
 0x2cb   : > { %v1285_v46 = vpop.f32.mrb[71].mxu0  ;;  %1706 = vmax.xlane.f32.xlu1 %v2979_v34  ;;  %v2985_v48 = vadd.f32 %v1283_v45, %v2963_v30 }
 0x2cc   : > { %v1286_v47 = vadd.f32 %v1285_v46, %v2966_v39  ;;  %v1430_v49 = vmax.f32 %v1282_v44, 0.0 }
 0x2ce   : > { %v1431_v50 = vmax.f32 %v1286_v47, 0.0 }
 0x2cf   : > { %1708 = vmax.xlane.f32.xlu1 %v2985_v48 }
 0x2d0   : > { %v1478_v51 = vpack.c.bf16 %v1431_v50, %v1430_v49  ;;  %v1289_v52 = vpop.f32.mrb[72].mxu0 }
 0x2d1   : > { %v2989_v53 = vadd.f32 %v1289_v52, %v2963_v30  ;;  %v1291_v54 = vpop.f32.mrb[73].mxu0 }
 0x2d2   : > { %v1292_v55 = vadd.f32 %v1291_v54, %v2966_v39  ;;  %v1293_v56 = vpop.f32.mrb[74].mxu0  ;;  %2333 = vmatmul.mubr.bf16.vlgmr.msra.gmra.mrb[64].mxu1 %v1478_v51 }
 0x2d3   : > { %v2993_v57 = vadd.f32 %v1293_v56, %v2963_v30  ;;  %v1295_v58 = vpop.f32.mrb[75].mxu0  ;;  %1710 = vmax.xlane.f32.xlu0 %v2989_v53 }
 0x2d4   : > { %v1296_v59 = vadd.f32 %v1295_v58, %v2966_v39  ;;  %v1432_v60 = vmax.f32 %v1292_v55, 0.0 }
 0x2d5   : > { %1712 = vmax.xlane.f32.xlu1 %v2993_v57 }
 0x2d6   : > { %v1433_v61 = vmax.f32 %v1296_v59, 0.0 }
 0x2d8   : > { %v1479_v62 = vpack.c.bf16 %v1433_v61, %v1432_v60  ;;  %v1299_v63 = vpop.f32.mrb[76].mxu0 }
 0x2d9   : > { %v2999_v1 = vadd.f32 %v1299_v63, %v2963_v30  ;;  %v1301_v2 = vpop.f32.mrb[77].mxu0 }
 0x2da   : > { %v1302_v3 = vadd.f32 %v1301_v2, %v2966_v39  ;;  %v1303_v4 = vpop.f32.mrb[78].mxu0  ;;  %2336 = vmatprep.mubr.bf16.mxu1 %v1479_v62 }
 0x2db   : > { %v3003_v5 = vadd.f32 %v1303_v4, %v2963_v30  ;;  %v1305_v6 = vpop.f32.mrb[79].mxu0  ;;  %1714 = vmax.xlane.f32.xlu0 %v2999_v1 }
 0x2dc   : > { %v1306_v7 = vadd.f32 %v1305_v6, %v2966_v39  ;;  %v1434_v8 = vmax.f32 %v1302_v3, 0.0 }
 0x2dd   : > { %1716 = vmax.xlane.f32.xlu1 %v3003_v5 }
 0x2de   : > { %v1435_v9 = vmax.f32 %v1306_v7, 0.0 }
 0x2e0   : > { %v1480_v10 = vpack.c.bf16 %v1435_v9, %v1434_v8  ;;  %v1309_v11 = vpop.f32.mrb[80].mxu0 }
 0x2e1   : > { %v3009_v12 = vadd.f32 %v1309_v11, %v2963_v30  ;;  %v1311_v13 = vpop.f32.mrb[81].mxu0 }
 0x2e2   : > { %v1312_v14 = vadd.f32 %v1311_v13, %v2966_v39  ;;  %v1313_v15 = vpop.f32.mrb[82].mxu0  ;;  %2337 = vmatmul.mubr.bf16.gmra.mrb[68].mxu1 %v1480_v10 }
 0x2e3   : > { %v3013_v16 = vadd.f32 %v1313_v15, %v2963_v30  ;;  %v1315_v17 = vpop.f32.mrb[83].mxu0  ;;  %1718 = vmax.xlane.f32.xlu0 %v3009_v12 }
 0x2e4   : > { %v1316_v18 = vadd.f32 %v1315_v17, %v2966_v39  ;;  %v1436_v19 = vmax.f32 %v1312_v14, 0.0 }
 0x2e5   : > { %1720 = vmax.xlane.f32.xlu1 %v3013_v16 }
 0x2e6   : > { %v1437_v20 = vmax.f32 %v1316_v18, 0.0 }
 0x2e8   : > { %v1481_v21 = vpack.c.bf16 %v1437_v20, %v1436_v19  ;;  %v1319_v22 = vpop.f32.mrb[84].mxu0 }
 0x2e9   : > { %v3019_v23 = vadd.f32 %v1319_v22, %v2963_v30  ;;  %v1321_v24 = vpop.f32.mrb[85].mxu0 }
 0x2ea   : > { %v1322_v25 = vadd.f32 %v1321_v24, %v2966_v39  ;;  %v1323_v26 = vpop.f32.mrb[86].mxu0  ;;  %2340 = vmatprep.mubr.bf16.mxu1 %v1481_v21 }
 0x2eb   : > { %v3023_v27 = vadd.f32 %v1323_v26, %v2963_v30  ;;  %v1325_v28 = vpop.f32.mrb[87].mxu0  ;;  %1722 = vmax.xlane.f32.xlu0 %v3019_v23 }
 0x2ec   : > { %v1326_v31 = vadd.f32 %v1325_v28, %v2966_v39  ;;  %v1438_v33 = vmax.f32 %v1322_v25, 0.0 }
 0x2ed   : > { %1724 = vmax.xlane.f32.xlu1 %v3023_v27 }
 0x2ee   : > { %v1439_v35 = vmax.f32 %v1326_v31, 0.0 }
 0x2f0   : > { %v1482_v36 = vpack.c.bf16 %v1439_v35, %v1438_v33  ;;  %v1329_v37 = vpop.f32.mrb[88].mxu0 }
 0x2f1   : > { %v3029_v38 = vadd.f32 %v1329_v37, %v2963_v30  ;;  %v1331_v0 = vpop.f32.mrb[89].mxu0 }
 0x2f2   : > { %v1332_v41 = vadd.f32 %v1331_v0, %v2966_v39  ;;  %v1333_v29 = vpop.f32.mrb[90].mxu0  ;;  %2341 = vmatmul.mubr.bf16.gmra.mrb[72].mxu1 %v1482_v36 }
 0x2f3   : > { %v3033_v42 = vadd.f32 %v1333_v29, %v2963_v30  ;;  %v1335_v43 = vpop.f32.mrb[91].mxu0  ;;  %1726 = vmax.xlane.f32.xlu0 %v3029_v38 }
 0x2f4   : > { %v1336_v44 = vadd.f32 %v1335_v43, %v2966_v39  ;;  %v1440_v45 = vmax.f32 %v1332_v41, 0.0 }
 0x2f5   : > { %1728 = vmax.xlane.f32.xlu1 %v3033_v42 }
 0x2f6   : > { %v1441_v46 = vmax.f32 %v1336_v44, 0.0 }
 0x2f8   : > { %v1483_v47 = vpack.c.bf16 %v1441_v46, %v1440_v45  ;;  %v1339_v49 = vpop.f32.mrb[92].mxu0 }
 0x2f9   : > { %v3039_v50 = vadd.f32 %v1339_v49, %v2963_v30  ;;  %v1341_v51 = vpop.f32.mrb[93].mxu0 }
 0x2fa   : > { %v1342_v52 = vadd.f32 %v1341_v51, %v2966_v39  ;;  %v1343_v54 = vpop.f32.mrb[94].mxu0  ;;  %2344 = vmatprep.mubr.bf16.mxu1 %v1483_v47 }
 0x2fb   : > { %v3043_v55 = vadd.f32 %v1343_v54, %v2963_v30  ;;  %v1345_v56 = vpop.f32.mrb[95].mxu0  ;;  %1730 = vmax.xlane.f32.xlu0 %v3039_v50 }
 0x2fc   : > { %v1346_v58 = vadd.f32 %v1345_v56, %v2966_v39  ;;  %v1442_v59 = vmax.f32 %v1342_v52, 0.0 }
 0x2fd   : > { %1732 = vmax.xlane.f32.xlu1 %v3043_v55 }
 0x2fe   : > { %v1443_v60 = vmax.f32 %v1346_v58, 0.0 }
 0x300   : > { %v1484_v61 = vpack.c.bf16 %v1443_v60, %v1442_v59  ;;  %v1349_v62 = vpop.f32.mrb[96].mxu0 }
 0x301   : > { %v3049_v63 = vadd.f32 %v1349_v62, %v2963_v30  ;;  %v1351_v2 = vpop.f32.mrb[97].mxu0 }
 0x302   : > { %v1352_v3 = vadd.f32 %v1351_v2, %v2966_v39  ;;  %v1353_v4 = vpop.f32.mrb[98].mxu0  ;;  %2345 = vmatmul.mubr.bf16.gmra.mrb[76].mxu1 %v1484_v61 }
 0x303   : > { %v3053_v6 = vadd.f32 %v1353_v4, %v2963_v30  ;;  %v1355_v7 = vpop.f32.mrb[99].mxu0  ;;  %1734 = vmax.xlane.f32.xlu0 %v3049_v63 }
 0x304   : > { %v1356_v8 = vadd.f32 %v1355_v7, %v2966_v39  ;;  %v1444_v9 = vmax.f32 %v1352_v3, 0.0 }
 0x305   : > { %1736 = vmax.xlane.f32.xlu1 %v3053_v6 }
 0x306   : > { %v1445_v10 = vmax.f32 %v1356_v8, 0.0 }
 0x308   : > { %v1485_v11 = vpack.c.bf16 %v1445_v10, %v1444_v9  ;;  %v1359_v13 = vpop.f32.mrb[100].mxu0 }
 0x309   : > { %v3059_v14 = vadd.f32 %v1359_v13, %v2963_v30  ;;  %v1361_v15 = vpop.f32.mrb[101].mxu0 }
 0x30a   : > { %v1362_v17 = vadd.f32 %v1361_v15, %v2966_v39  ;;  %v1363_v18 = vpop.f32.mrb[102].mxu0  ;;  %2348 = vmatprep.mubr.bf16.mxu1 %v1485_v11 }
 0x30b   : > { %v3063_v19 = vadd.f32 %v1363_v18, %v2963_v30  ;;  %v1365_v20 = vpop.f32.mrb[103].mxu0  ;;  %1738 = vmax.xlane.f32.xlu0 %v3059_v14 }
 0x30c   : > { %v1366_v21 = vadd.f32 %v1365_v20, %v2966_v39  ;;  %v1446_v22 = vmax.f32 %v1362_v17, 0.0 }
 0x30d   : > { %1740 = vmax.xlane.f32.xlu1 %v3063_v19 }
 0x30e   : > { %v1447_v24 = vmax.f32 %v1366_v21, 0.0 }
 0x310   : > { %v1486_v25 = vpack.c.bf16 %v1447_v24, %v1446_v22  ;;  %v1369_v26 = vpop.f32.mrb[104].mxu0 }
 0x311   : > { %v3069_v28 = vadd.f32 %v1369_v26, %v2963_v30  ;;  %v1371_v31 = vpop.f32.mrb[105].mxu0 }
 0x312   : > { %v1372_v33 = vadd.f32 %v1371_v31, %v2966_v39  ;;  %v1373_v35 = vpop.f32.mrb[106].mxu0  ;;  %2349 = vmatmul.mubr.bf16.gmra.mrb[80].mxu1 %v1486_v25 }
 0x313   : > { %v3073_v36 = vadd.f32 %v1373_v35, %v2963_v30  ;;  %v1375_v37 = vpop.f32.mrb[107].mxu0  ;;  %1742 = vmax.xlane.f32.xlu0 %v3069_v28 }
 0x314   : > { %v1376_v0 = vadd.f32 %v1375_v37, %v2966_v39  ;;  %v1448_v41 = vmax.f32 %v1372_v33, 0.0 }
 0x315   : > { %1744 = vmax.xlane.f32.xlu1 %v3073_v36 }
 0x316   : > { %v1449_v29 = vmax.f32 %v1376_v0, 0.0 }
 0x318   : > { %v1487_v43 = vpack.c.bf16 %v1449_v29, %v1448_v41  ;;  %v1379_v44 = vpop.f32.mrb[108].mxu0 }
 0x319   : > { %v3079_v45 = vadd.f32 %v1379_v44, %v2963_v30  ;;  %v1381_v46 = vpop.f32.mrb[109].mxu0 }
 0x31a   : > { %v1382_v47 = vadd.f32 %v1381_v46, %v2966_v39  ;;  %v1383_v49 = vpop.f32.mrb[110].mxu0  ;;  %2352 = vmatprep.mubr.bf16.mxu1 %v1487_v43 }
 0x31b   : > { %v3083_v51 = vadd.f32 %v1383_v49, %v2963_v30  ;;  %v1385_v52 = vpop.f32.mrb[111].mxu0  ;;  %1746 = vmax.xlane.f32.xlu0 %v3079_v45 }
 0x31c   : > { %v1386_v54 = vadd.f32 %v1385_v52, %v2966_v39  ;;  %v1450_v56 = vmax.f32 %v1382_v47, 0.0 }
 0x31d   : > { %1748 = vmax.xlane.f32.xlu1 %v3083_v51 }
 0x31e   : > { %v1451_v58 = vmax.f32 %v1386_v54, 0.0 }
 0x320   : > { %v1488_v59 = vpack.c.bf16 %v1451_v58, %v1450_v56  ;;  %v1389_v60 = vpop.f32.mrb[112].mxu0 }
 0x321   : > { %v3089_v61 = vadd.f32 %v1389_v60, %v2963_v30  ;;  %v1391_v62 = vpop.f32.mrb[113].mxu0 }
 0x322   : > { %v1392_v2 = vadd.f32 %v1391_v62, %v2966_v39  ;;  %v1393_v3 = vpop.f32.mrb[114].mxu0  ;;  %2353 = vmatmul.mubr.bf16.gmra.mrb[84].mxu1 %v1488_v59 }
 0x323   : > { %v3093_v4 = vadd.f32 %v1393_v3, %v2963_v30  ;;  %v1395_v7 = vpop.f32.mrb[115].mxu0  ;;  %1750 = vmax.xlane.f32.xlu0 %v3089_v61 }
 0x324   : > { %v1396_v8 = vadd.f32 %v1395_v7, %v2966_v39  ;;  %v1452_v9 = vmax.f32 %v1392_v2, 0.0 }
 0x325   : > { %1752 = vmax.xlane.f32.xlu1 %v3093_v4 }
 0x326   : > { %v1453_v10 = vmax.f32 %v1396_v8, 0.0 }
 0x328   : > { %v1489_v11 = vpack.c.bf16 %v1453_v10, %v1452_v9  ;;  %v1399_v13 = vpop.f32.mrb[116].mxu0 }
 0x329   : > { %v3099_v15 = vadd.f32 %v1399_v13, %v2963_v30  ;;  %v1401_v17 = vpop.f32.mrb[117].mxu0 }
 0x32a   : > { %v1402_v18 = vadd.f32 %v1401_v17, %v2966_v39  ;;  %v1403_v20 = vpop.f32.mrb[118].mxu0  ;;  %2356 = vmatprep.mubr.bf16.mxu1 %v1489_v11 }
 0x32b   : > { %v3103_v21 = vadd.f32 %v1403_v20, %v2963_v30  ;;  %v1405_v22 = vpop.f32.mrb[119].mxu0  ;;  %1754 = vmax.xlane.f32.xlu0 %v3099_v15 }
 0x32c   : > { %v1406_v24 = vadd.f32 %v1405_v22, %v2966_v39  ;;  %v1454_v25 = vmax.f32 %v1402_v18, 0.0 }
 0x32d   : > { %1756 = vmax.xlane.f32.xlu1 %v3103_v21 }
 0x32e   : > { %v1455_v26 = vmax.f32 %v1406_v24, 0.0 }
 0x330   : > { %v1490_v31 = vpack.c.bf16 %v1455_v26, %v1454_v25  ;;  %v1409_v33 = vpop.f32.mrb[120].mxu0 }
 0x331   : > { %v3109_v35 = vadd.f32 %v1409_v33, %v2963_v30  ;;  %v1411_v37 = vpop.f32.mrb[121].mxu0 }
 0x332   : > { %v1412_v0 = vadd.f32 %v1411_v37, %v2966_v39  ;;  %v1413_v41 = vpop.f32.mrb[122].mxu0  ;;  %2357 = vmatmul.mubr.bf16.gmra.mrb[88].mxu1 %v1490_v31 }
 0x333   : > { %v3113_v29 = vadd.f32 %v1413_v41, %v2963_v30  ;;  %v1415_v43 = vpop.f32.mrb[123].mxu0  ;;  %1758 = vmax.xlane.f32.xlu0 %v3109_v35 }
 0x334   : > { %v1416_v44 = vadd.f32 %v1415_v43, %v2966_v39  ;;  %v1456_v46 = vmax.f32 %v1412_v0, 0.0 }
 0x335   : > { %1760 = vmax.xlane.f32.xlu1 %v3113_v29 }
 0x336   : > { %v1457_v47 = vmax.f32 %v1416_v44, 0.0 }
 0x338   : > { %v1491_v49 = vpack.c.bf16 %v1457_v47, %v1456_v46  ;;  %v1419_v52 = vpop.f32.mrb[124].mxu0 }
 0x339   : > { %v3119_v54 = vadd.f32 %v1419_v52, %v2963_v30  ;;  %v1421_v56 = vpop.f32.mrb[125].mxu0 }
 0x33a   : > { %v1422_v58 = vadd.f32 %v1421_v56, %v2966_v39  ;;  %v1423_v59 = vpop.f32.mrb[126].mxu0  ;;  %2360 = vmatprep.mubr.bf16.mxu1 %v1491_v49 }
 0x33b   : > { %v3123_v60 = vadd.f32 %v1423_v59, %v2963_v30  ;;  %v1425_v62 = vpop.f32.mrb[127].mxu0  ;;  %1762 = vmax.xlane.f32.xlu0 %v3119_v54 }
 0x33c   : > { %v1426_v2 = vadd.f32 %v1425_v62, %v2966_v39  ;;  %v1458_v3 = vmax.f32 %v1422_v58, 0.0 }
 0x33d   : > { %1764 = vmax.xlane.f32.xlu1 %v3123_v60 }
 0x33e   : > { %v1459_v7 = vmax.f32 %v1426_v2, 0.0 }
 0x340   : > { %v1492_v8 = vpack.c.bf16 %v1459_v7, %v1458_v3 }
 0x342   : > { %2361 = vmatmul.mubr.bf16.gmra.mrb[92].mxu1 %v1492_v8 }
 0x350   : > { %v1703_v9 = vpop.xlane.xlu0 %1702 }
 0x351   : > { %v1766_v10 = vsub.f32 %v2969_v40, %v1703_v9 }
 0x353   : > { %v1798_v11 = vmul.f32 1.442695, %v1766_v10 }
 0x354   : > { %v1705_v13 = vpop.xlane.xlu0 %1704 }
 0x355   : > { %2493 = vpow2.f32 %v1798_v11  ;;  %v1767_v30 = vsub.f32 %v2975_v32, %v1705_v13 }
 0x357   : > { %v1800_v17 = vmul.f32 1.442695, %v1767_v30 }
 0x358   : > { %v1707_v18 = vpop.xlane.xlu1 %1706 }
 0x359   : > { %2495 = vpow2.f32 %v1800_v17  ;;  %v1768_v20 = vsub.f32 %v2979_v34, %v1707_v18 }
 0x35b   : > { %v1802_v39 = vmul.f32 1.442695, %v1768_v20 }
 0x35c   : > { %v1709_v22 = vpop.xlane.xlu1 %1708 }
 0x35d   : > { %2497 = vpow2.f32 %v1802_v39  ;;  %v1769_v24 = vsub.f32 %v2985_v48, %v1709_v22 }
 0x35f   : > { %v3132_v25 = vpop.eup %2493  ;;  %v1804_v26 = vmul.f32 1.442695, %v1769_v24 }
 0x360   : > { %1958 = vadd.xlane.f32.xlu0 %v3132_v25  ;;  %v1711_v40 = vpop.xlane.xlu0 %1710 }
 0x361   : > { %2499 = vpow2.f32 %v1804_v26  ;;  %v1770_v31 = vsub.f32 %v2989_v53, %v1711_v40 }
 0x362   : > { %v1713_v32 = vpop.xlane.xlu1 %1712 }
 0x363   : > { %v3136_v33 = vpop.eup %2495  ;;  %v1806_v37 = vmul.f32 1.442695, %v1770_v31  ;;  %v1771_v34 = vsub.f32 %v2993_v57, %v1713_v32 }
 0x364   : > { %1960 = vadd.xlane.f32.xlu1 %v3136_v33 }
 0x365   : > { %2501 = vpow2.f32 %v1806_v37  ;;  %v1808_v0 = vmul.f32 1.442695, %v1771_v34 }
 0x367   : > { %v3140_v48 = vpop.eup %2497  ;;  %2503 = vpow2.f32 %v1808_v0 }
 0x368   : > { %1962 = vadd.xlane.f32.xlu0 %v3140_v48  ;;  %v1715_v41 = vpop.xlane.xlu0 %1714 }
 0x369   : > { %v1772_v43 = vsub.f32 %v2999_v1, %v1715_v41 }
 0x36a   : > { %v1717_v44 = vpop.xlane.xlu1 %1716 }
 0x36b   : > { %v3144_v53 = vpop.eup %2499  ;;  %v1810_v46 = vmul.f32 1.442695, %v1772_v43  ;;  %v1773_v47 = vsub.f32 %v3003_v5, %v1717_v44 }
 0x36c   : > { %1964 = vadd.xlane.f32.xlu1 %v3144_v53 }
 0x36d   : > { %2505 = vpow2.f32 %v1810_v46  ;;  %v1812_v57 = vmul.f32 1.442695, %v1773_v47 }
 0x36f   : > { %v3148_v49 = vpop.eup %2501  ;;  %2507 = vpow2.f32 %v1812_v57 }
 0x370   : > { %1966 = vadd.xlane.f32.xlu0 %v3148_v49  ;;  %v1719_v52 = vpop.xlane.xlu0 %1718 }
 0x371   : > { %v3151_v56 = vpop.eup %2503  ;;  %v1774_v1 = vsub.f32 %v3009_v12, %v1719_v52 }
 0x372   : > { %v1721_v58 = vpop.xlane.xlu1 %1720  ;;  %1968 = vadd.xlane.f32.xlu1 %v3151_v56 }
 0x373   : > { %v1814_v59 = vmul.f32 1.442695, %v1774_v1  ;;  %v1775_v5 = vsub.f32 %v3013_v16, %v1721_v58 }
 0x375   : > { %2509 = vpow2.f32 %v1814_v59  ;;  %v1816_v62 = vmul.f32 1.442695, %v1775_v5 }
 0x377   : > { %v3156_v2 = vpop.eup %2505  ;;  %2511 = vpow2.f32 %v1816_v62 }
 0x378   : > { %1970 = vadd.xlane.f32.xlu0 %v3156_v2  ;;  %v1723_v3 = vpop.xlane.xlu0 %1722 }
 0x379   : > { %v3159_v7 = vpop.eup %2507  ;;  %v1776_v8 = vsub.f32 %v3019_v23, %v1723_v3 }
 0x37a   : > { %v1725_v9 = vpop.xlane.xlu1 %1724  ;;  %1972 = vadd.xlane.f32.xlu1 %v3159_v7 }
 0x37b   : > { %v1818_v12 = vmul.f32 1.442695, %v1776_v8  ;;  %v1777_v10 = vsub.f32 %v3023_v27, %v1725_v9 }
 0x37d   : > { %2513 = vpow2.f32 %v1818_v12  ;;  %v1820_v16 = vmul.f32 1.442695, %v1777_v10 }
 0x37f   : > { %v3164_v11 = vpop.eup %2509  ;;  %2515 = vpow2.f32 %v1820_v16 }
 0x380   : > { %1974 = vadd.xlane.f32.xlu0 %v3164_v11  ;;  %v1727_v13 = vpop.xlane.xlu0 %1726 }
 0x381   : > { %v3167_v30 = vpop.eup %2511  ;;  %v1778_v17 = vsub.f32 %v3029_v38, %v1727_v13 }
 0x382   : > { %v1729_v18 = vpop.xlane.xlu1 %1728  ;;  %1976 = vadd.xlane.f32.xlu1 %v3167_v30 }
 0x383   : > { %v1822_v23 = vmul.f32 1.442695, %v1778_v17  ;;  %v1779_v20 = vsub.f32 %v3033_v42, %v1729_v18 }
 0x385   : > { %2517 = vpow2.f32 %v1822_v23  ;;  %v1824_v27 = vmul.f32 1.442695, %v1779_v20 }
 0x387   : > { %v3172_v39 = vpop.eup %2513  ;;  %2519 = vpow2.f32 %v1824_v27 }
 0x388   : > { %1978 = vadd.xlane.f32.xlu0 %v3172_v39  ;;  %v1731_v22 = vpop.xlane.xlu0 %1730 }
 0x389   : > { %v3175_v24 = vpop.eup %2515  ;;  %v1780_v26 = vsub.f32 %v3039_v50, %v1731_v22 }
 0x38a   : > { %v1733_v40 = vpop.xlane.xlu1 %1732  ;;  %1980 = vadd.xlane.f32.xlu1 %v3175_v24 }
 0x38b   : > { %v1826_v38 = vmul.f32 1.442695, %v1780_v26  ;;  %v1781_v31 = vsub.f32 %v3043_v55, %v1733_v40 }
 0x38d   : > { %2521 = vpow2.f32 %v1826_v38  ;;  %v1828_v42 = vmul.f32 1.442695, %v1781_v31 }
 0x38f   : > { %v3180_v32 = vpop.eup %2517  ;;  %2523 = vpow2.f32 %v1828_v42 }
 0x390   : > { %1982 = vadd.xlane.f32.xlu0 %v3180_v32  ;;  %v1735_v37 = vpop.xlane.xlu0 %1734 }
 0x391   : > { %v3183_v34 = vpop.eup %2519  ;;  %v1782_v0 = vsub.f32 %v3049_v63, %v1735_v37 }
 0x392   : > { %v1737_v41 = vpop.xlane.xlu1 %1736  ;;  %1984 = vadd.xlane.f32.xlu1 %v3183_v34 }
 0x393   : > { %v1830_v50 = vmul.f32 1.442695, %v1782_v0  ;;  %v1783_v43 = vsub.f32 %v3053_v6, %v1737_v41 }
 0x395   : > { %2525 = vpow2.f32 %v1830_v50  ;;  %v1832_v55 = vmul.f32 1.442695, %v1783_v43 }
 0x397   : > { %v3188_v44 = vpop.eup %2521  ;;  %2527 = vpow2.f32 %v1832_v55 }
 0x398   : > { %1986 = vadd.xlane.f32.xlu0 %v3188_v44  ;;  %v1739_v46 = vpop.xlane.xlu0 %1738 }
 0x399   : > { %v3191_v47 = vpop.eup %2523  ;;  %v1784_v57 = vsub.f32 %v3059_v14, %v1739_v46 }
 0x39a   : > { %v1741_v52 = vpop.xlane.xlu1 %1740  ;;  %1988 = vadd.xlane.f32.xlu1 %v3191_v47 }
 0x39b   : > { %v1834_v63 = vmul.f32 1.442695, %v1784_v57  ;;  %v1785_v1 = vsub.f32 %v3063_v19, %v1741_v52  ;;  %v3207_v19 = vld [vmem:[%s3461_s2 + $0x3] ss:$0 sm:$0xff] }
 0x39d   : > { %2529 = vpow2.f32 %v1834_v63  ;;  %v1836_v6 = vmul.f32 1.442695, %v1785_v1 }
 0x39f   : > { %v3196_v58 = vpop.eup %2525  ;;  %2531 = vpow2.f32 %v1836_v6 }
 0x3a0   : > { %1990 = vadd.xlane.f32.xlu0 %v3196_v58  ;;  %v1743_v59 = vpop.xlane.xlu0 %1742 }
 0x3a1   : > { %v3199_v5 = vpop.eup %2527  ;;  %v1786_v62 = vsub.f32 %v3069_v28, %v1743_v59 }
 0x3a2   : > { %v1745_v3 = vpop.xlane.xlu1 %1744  ;;  %1992 = vadd.xlane.f32.xlu1 %v3199_v5 }
 0x3a3   : > { %v1787_v14 = vsub.f32 %v3073_v36, %v1745_v3  ;;  %v1838_v8 = vmul.f32 1.442695, %v1786_v62 }
 0x3a5   : > { %v2334_v9 = vpop.f32.mrb[64].mxu1  ;;  %v1840_v13 = vmul.f32 1.442695, %v1787_v14  ;;  %2533 = vpow2.f32 %v1838_v8 }
 0x3a6   : > { %v1584_v12 = vadd.f32 %v2334_v9, %v3207_v19  ;;  %v1575_v10 = vpop.f32.mrb[65].mxu1 }
 0x3a7   : > { %v3210_v16 = vpop.eup %2529  ;;  %v2335_v17 = vpop.f32.mrb[66].mxu1  ;;  %v1576_v22 = vadd.f32 %v1575_v10, %v3207_v19  ;;  %2535 = vpow2.f32 %v1840_v13 }
 0x3a8   : > { %v1587_v28 = vadd.f32 %v2335_v17, %v3207_v19  ;;  %v1578_v18 = vpop.f32.mrb[67].mxu1  ;;  %1994 = vadd.xlane.f32.xlu0 %v3210_v16  ;;  %v1747_v36 = vpop.xlane.xlu0 %1746  ;;  %v1864_v23 = vmul.f32 %v3140_v48, %v1584_v12 }
 0x3a9   : > { %v3215_v20 = vpop.eup %2531  ;;  %v1788_v27 = vsub.f32 %v3079_v45, %v1747_v36  ;;  %v1579_v42 = vadd.f32 %v1578_v18, %v3207_v19  ;;  %v1862_v37 = vmul.f32 %v3132_v25, %v1576_v22 }
 0x3aa   : > { %v1749_v26 = vpop.xlane.xlu1 %1748  ;;  %1996 = vadd.xlane.f32.xlu1 %v3215_v20  ;;  %v1865_v40 = vmul.f32 %v3144_v53, %v1587_v28 }
 0x3ab   : > { %v1842_v38 = vmul.f32 1.442695, %v1788_v27  ;;  %v1789_v31 = vsub.f32 %v3083_v51, %v1749_v26  ;;  %v1863_v0 = vmul.f32 %v3136_v33, %v1579_v42 }
 0x3ac   : > { %1898 = vadd.xlane.f32.xlu0 %v1864_v23 }
 0x3ad   : > { %2537 = vpow2.f32 %v1842_v38  ;;  %v1844_v48 = vmul.f32 1.442695, %v1789_v31 }
 0x3ae   : > { %1900 = vadd.xlane.f32.xlu1 %v1865_v40 }
 0x3af   : > { %2539 = vpow2.f32 %v1844_v48  ;;  %v3226_v50 = vpop.eup %2533 }
 0x3b0   : > { %1894 = vadd.xlane.f32.xlu0 %v1862_v37  ;;  %v1751_v45 = vpop.xlane.xlu0 %1750 }
 0x3b1   : > { %v1790_v41 = vsub.f32 %v3089_v61, %v1751_v45  ;;  %v3230_v43 = vpop.eup %2535 }
 0x3b2   : > { %v1753_v53 = vpop.xlane.xlu1 %1752  ;;  %1896 = vadd.xlane.f32.xlu1 %v1863_v0 }
 0x3b3   : > { %v1791_v51 = vsub.f32 %v3093_v4, %v1753_v53  ;;  %v1846_v55 = vmul.f32 1.442695, %v1790_v41 }
 0x3b4   : > { %1998 = vadd.xlane.f32.xlu0 %v3226_v50 }
 0x3b5   : > { %v2338_v46 = vpop.f32.mrb[68].mxu1  ;;  %v1848_v61 = vmul.f32 1.442695, %v1791_v51  ;;  %2541 = vpow2.f32 %v1846_v55 }
 0x3b6   : > { %v1600_v25 = vadd.f32 %v2338_v46, %v3207_v19  ;;  %v1591_v57 = vpop.f32.mrb[69].mxu1  ;;  %2000 = vadd.xlane.f32.xlu1 %v3230_v43 }
 0x3b7   : > { %v3234_v33 = vpop.eup %2537  ;;  %v2339_v52 = vpop.f32.mrb[70].mxu1  ;;  %v1592_v3 = vadd.f32 %v1591_v57, %v3207_v19  ;;  %2543 = vpow2.f32 %v1848_v61 }
 0x3b8   : > { %v1603_v63 = vadd.f32 %v2339_v52, %v3207_v19  ;;  %v1594_v1 = vpop.f32.mrb[71].mxu1  ;;  %2002 = vadd.xlane.f32.xlu0 %v3234_v33  ;;  %v1755_v4 = vpop.xlane.xlu0 %1754  ;;  %v1868_v6 = vmul.f32 %v3156_v2, %v1600_v25 }
 0x3b9   : > { %v3239_v59 = vpop.eup %2539  ;;  %v1792_v62 = vsub.f32 %v3099_v15, %v1755_v4  ;;  %v1595_v10 = vadd.f32 %v1594_v1, %v3207_v19  ;;  %v1866_v13 = vmul.f32 %v3148_v49, %v1592_v3 }
 0x3ba   : > { %v1757_v14 = vpop.xlane.xlu1 %1756  ;;  %2004 = vadd.xlane.f32.xlu1 %v3239_v59  ;;  %v1869_v8 = vmul.f32 %v3159_v7, %v1603_v63 }
 0x3bb   : > { %v1850_v9 = vmul.f32 1.442695, %v1792_v62  ;;  %v1793_v12 = vsub.f32 %v3103_v21, %v1757_v14  ;;  %v1867_v17 = vmul.f32 %v3151_v56, %v1595_v10 }
 0x3bc   : > { %1906 = vadd.xlane.f32.xlu0 %v1868_v6 }
 0x3bd   : > { %2545 = vpow2.f32 %v1850_v9  ;;  %v1852_v2 = vmul.f32 1.442695, %v1793_v12 }
 0x3be   : > { %1908 = vadd.xlane.f32.xlu1 %v1869_v8 }
 0x3bf   : > { %2547 = vpow2.f32 %v1852_v2  ;;  %v3250_v18 = vpop.eup %2541 }
 0x3c0   : > { %1902 = vadd.xlane.f32.xlu0 %v1866_v13  ;;  %v1759_v15 = vpop.xlane.xlu0 %1758 }
 0x3c1   : > { %v1794_v28 = vsub.f32 %v3109_v35, %v1759_v15  ;;  %v3254_v36 = vpop.eup %2543 }
 0x3c2   : > { %v1761_v7 = vpop.xlane.xlu1 %1760  ;;  %1904 = vadd.xlane.f32.xlu1 %v1867_v17 }
 0x3c3   : > { %v1795_v21 = vsub.f32 %v3113_v29, %v1761_v7  ;;  %v1854_v23 = vmul.f32 1.442695, %v1794_v28 }
 0x3c4   : > { %2006 = vadd.xlane.f32.xlu0 %v3250_v18 }
 0x3c5   : > { %v2342_v27 = vpop.f32.mrb[72].mxu1  ;;  %v1856_v35 = vmul.f32 1.442695, %v1795_v21  ;;  %2549 = vpow2.f32 %v1854_v23 }
 0x3c6   : > { %v1616_v49 = vadd.f32 %v2342_v27, %v3207_v19  ;;  %v1607_v22 = vpop.f32.mrb[73].mxu1  ;;  %2008 = vadd.xlane.f32.xlu1 %v3254_v36 }
 0x3c7   : > { %v3258_v56 = vpop.eup %2545  ;;  %v2343_v26 = vpop.f32.mrb[74].mxu1  ;;  %v1608_v37 = vadd.f32 %v1607_v22, %v3207_v19  ;;  %2551 = vpow2.f32 %v1856_v35 }
 0x3c8   : > { %v1619_v40 = vadd.f32 %v2343_v26, %v3207_v19  ;;  %v1610_v38 = vpop.f32.mrb[75].mxu1  ;;  %2010 = vadd.xlane.f32.xlu0 %v3258_v56  ;;  %v1763_v29 = vpop.xlane.xlu0 %1762  ;;  %v1872_v31 = vmul.f32 %v3172_v39, %v1616_v49 }
 0x3c9   : > { %v3263_v42 = vpop.eup %2547  ;;  %v1796_v48 = vsub.f32 %v3119_v54, %v1763_v29  ;;  %v1611_v51 = vadd.f32 %v1610_v38, %v3207_v19  ;;  %v1870_v55 = vmul.f32 %v3164_v11, %v1608_v37 }
 0x3ca   : > { %v1765_v45 = vpop.xlane.xlu1 %1764  ;;  %2012 = vadd.xlane.f32.xlu1 %v3263_v42  ;;  %v1873_v0 = vmul.f32 %v3175_v24, %v1619_v40 }
 0x3cb   : > { %v1858_v41 = vmul.f32 1.442695, %v1796_v48  ;;  %v1797_v53 = vsub.f32 %v3123_v60, %v1765_v45  ;;  %v1871_v54 = vmul.f32 %v3167_v30, %v1611_v51 }
 0x3cc   : > { %1914 = vadd.xlane.f32.xlu0 %v1872_v31 }
 0x3cd   : > { %2553 = vpow2.f32 %v1858_v41  ;;  %v1860_v39 = vmul.f32 1.442695, %v1797_v53 }
 0x3ce   : > { %1916 = vadd.xlane.f32.xlu1 %v1873_v0 }
 0x3cf   : > { %2555 = vpow2.f32 %v1860_v39  ;;  %v3273_v46 = vpop.eup %2549 }
 0x3d0   : > { %1910 = vadd.xlane.f32.xlu0 %v1870_v55 }
 0x3d1   : > { %v3276_v24 = vpop.eup %2551 }
 0x3d2   : > { %1912 = vadd.xlane.f32.xlu1 %v1871_v54 }
 0x3d4   : > { %2014 = vadd.xlane.f32.xlu0 %v3273_v46 }
 0x3d5   : > { %v2346_v60 = vpop.f32.mrb[76].mxu1 }
 0x3d6   : > { %v1632_v25 = vadd.f32 %v2346_v60, %v3207_v19  ;;  %v1623_v57 = vpop.f32.mrb[77].mxu1  ;;  %2016 = vadd.xlane.f32.xlu1 %v3276_v24 }
 0x3d7   : > { %v3280_v61 = vpop.eup %2553  ;;  %v2347_v11 = vpop.f32.mrb[78].mxu1  ;;  %v1624_v4 = vadd.f32 %v1623_v57, %v3207_v19 }
 0x3d8   : > { %v1635_v52 = vadd.f32 %v2347_v11, %v3207_v19  ;;  %v1626_v63 = vpop.f32.mrb[79].mxu1  ;;  %2018 = vadd.xlane.f32.xlu0 %v3280_v61  ;;  %v1876_v30 = vmul.f32 %v3188_v44, %v1632_v25 }
 0x3d9   : > { %v3285_v1 = vpop.eup %2555  ;;  %v1627_v62 = vadd.f32 %v1626_v63, %v3207_v19  ;;  %v1874_v3 = vmul.f32 %v3180_v32, %v1624_v4 }
 0x3da   : > { %2020 = vadd.xlane.f32.xlu1 %v3285_v1  ;;  %v1877_v6 = vmul.f32 %v3191_v47, %v1635_v52 }
 0x3db   : > { %v1875_v14 = vmul.f32 %v3183_v34, %v1627_v62 }
 0x3dc   : > { %1922 = vadd.xlane.f32.xlu0 %v1876_v30 }
 0x3de   : > { %1924 = vadd.xlane.f32.xlu1 %v1877_v6 }
 0x3e0   : > { %1918 = vadd.xlane.f32.xlu0 %v1874_v3 }
 0x3e2   : > { %1920 = vadd.xlane.f32.xlu1 %v1875_v14 }
 0x3e5   : > { %v2350_v8 = vpop.f32.mrb[80].mxu1 }
 0x3e6   : > { %v1648_v44 = vadd.f32 %v2350_v8, %v3207_v19  ;;  %v1639_v9 = vpop.f32.mrb[81].mxu1 }
 0x3e7   : > { %v2351_v12 = vpop.f32.mrb[82].mxu1  ;;  %v1640_v10 = vadd.f32 %v1639_v9, %v3207_v19 }
 0x3e8   : > { %v1651_v2 = vadd.f32 %v2351_v12, %v3207_v19  ;;  %v1642_v47 = vpop.f32.mrb[83].mxu1  ;;  %v1880_v13 = vmul.f32 %v3210_v16, %v1648_v44 }
 0x3e9   : > { %v1643_v15 = vadd.f32 %v1642_v47, %v3207_v19  ;;  %v1878_v34 = vmul.f32 %v3196_v58, %v1640_v10 }
 0x3ea   : > { %1930 = vadd.xlane.f32.xlu0 %v1880_v13  ;;  %v1881_v32 = vmul.f32 %v3215_v20, %v1651_v2 }
 0x3eb   : > { %v1879_v17 = vmul.f32 %v3199_v5, %v1643_v15 }
 0x3ec   : > { %1932 = vadd.xlane.f32.xlu1 %v1881_v32 }
 0x3ed   : > { %v1959_v0 = vpop.xlane.xlu0 %1958 }
 0x3ee   : > { %1926 = vadd.xlane.f32.xlu0 %v1878_v34 }
 0x3f0   : > { %1928 = vadd.xlane.f32.xlu1 %v1879_v17 }
 0x3f1   : > { %v1961_v41 = vpop.xlane.xlu1 %1960 }
 0x3f5   : > { %v2354_v28 = vpop.f32.mrb[84].mxu1  ;;  %v1963_v53 = vpop.xlane.xlu0 %1962 }
 0x3f6   : > { %v1664_v7 = vadd.f32 %v2354_v28, %v3207_v19  ;;  %v1655_v21 = vpop.f32.mrb[85].mxu1  ;;  %2557 = vrcp.f32 %v1963_v53 }
 0x3f7   : > { %v2355_v23 = vpop.f32.mrb[86].mxu1  ;;  %v1656_v27 = vadd.f32 %v1655_v21, %v3207_v19 }
 0x3f8   : > { %v1667_v16 = vadd.f32 %v2355_v23, %v3207_v19  ;;  %v1658_v49 = vpop.f32.mrb[87].mxu1  ;;  %v1884_v22 = vmul.f32 %v3234_v33, %v1664_v7 }
 0x3f9   : > { %v1659_v20 = vadd.f32 %v1658_v49, %v3207_v19  ;;  %v1882_v5 = vmul.f32 %v3226_v50, %v1656_v27 }
 0x3fa   : > { %1938 = vadd.xlane.f32.xlu0 %v1884_v22  ;;  %v1885_v58 = vmul.f32 %v3239_v59, %v1667_v16 }
 0x3fb   : > { %v1883_v35 = vmul.f32 %v3230_v43, %v1659_v20 }
 0x3fc   : > { %1940 = vadd.xlane.f32.xlu1 %v1885_v58 }
 0x3fd   : > { %v1967_v57 = vpop.xlane.xlu0 %1966 }
 0x3fe   : > { %1934 = vadd.xlane.f32.xlu0 %v1882_v5 }
 0x400   : > { %1936 = vadd.xlane.f32.xlu1 %v1883_v35  ;;  %v2558_v10 = vpop.eup %2557 }
 0x405   : > { %v2358_v26 = vpop.f32.mrb[88].mxu1  ;;  %v1971_v4 = vpop.xlane.xlu0 %1970 }
 0x406   : > { %v1680_v40 = vadd.f32 %v2358_v26, %v3207_v19  ;;  %v1671_v38 = vpop.f32.mrb[89].mxu1 }
 0x407   : > { %v2359_v29 = vpop.f32.mrb[90].mxu1  ;;  %v1672_v31 = vadd.f32 %v1671_v38, %v3207_v19 }
 0x408   : > { %v1683_v33 = vadd.f32 %v2359_v29, %v3207_v19  ;;  %v1674_v48 = vpop.f32.mrb[91].mxu1  ;;  %v1888_v37 = vmul.f32 %v3258_v56, %v1680_v40  ;;  %v1965_v56 = vpop.xlane.xlu1 %1964 }
 0x409   : > { %v1675_v59 = vadd.f32 %v1674_v48, %v3207_v19  ;;  %v1886_v43 = vmul.f32 %v3250_v18, %v1672_v31  ;;  %2559 = vrcp.f32 %v1965_v56 }
 0x40a   : > { %1946 = vadd.xlane.f32.xlu0 %v1888_v37  ;;  %v1889_v50 = vmul.f32 %v3263_v42, %v1683_v33  ;;  %2561 = vrcp.f32 %v1959_v0 }
 0x40b   : > { %v1887_v45 = vmul.f32 %v3254_v36, %v1675_v59  ;;  %2563 = vrcp.f32 %v1961_v41 }
 0x40c   : > { %1948 = vadd.xlane.f32.xlu1 %v1889_v50  ;;  %v1969_v63 = vpop.xlane.xlu1 %1968  ;;  %2565 = vrcp.f32 %v1971_v4 }
 0x40d   : > { %v1975_v62 = vpop.xlane.xlu0 %1974 }
 0x40e   : > { %1942 = vadd.xlane.f32.xlu0 %v1886_v43 }
 0x410   : > { %1944 = vadd.xlane.f32.xlu1 %v1887_v45  ;;  %v1973_v6 = vpop.xlane.xlu1 %1972 }
 0x411   : > { %2567 = vrcp.f32 %v1973_v6 }
 0x412   : > { %2569 = vrcp.f32 %v1967_v57 }
 0x413   : > { %v2560_v13 = vpop.eup %2559  ;;  %2571 = vrcp.f32 %v1969_v63 }
 0x414   : > { %v1977_v3 = vpop.xlane.xlu1 %1976  ;;  %v2562_v34 = vpop.eup %2561 }
 0x415   : > { %v2362_v51 = vpop.f32.mrb[92].mxu1  ;;  %v2564_v7 = vpop.eup %2563 }
 0x416   : > { %v1696_v39 = vadd.f32 %v2362_v51, %v3207_v19  ;;  %v1687_v55 = vpop.f32.mrb[93].mxu1  ;;  %v2566_v20 = vpop.eup %2565 }
 0x417   : > { %v1688_v54 = vadd.f32 %v1687_v55, %v3207_v19  ;;  %v2363_v60 = vpop.f32.mrb[94].mxu1 }
 0x418   : > { %v1699_v42 = vadd.f32 %v2363_v60, %v3207_v19  ;;  %v1690_v25 = vpop.f32.mrb[95].mxu1  ;;  %v1892_v18 = vmul.f32 %v3280_v61, %v1696_v39  ;;  %v1979_v61 = vpop.xlane.xlu0 %1978 }
 0x419   : > { %v1691_v36 = vadd.f32 %v1690_v25, %v3207_v19  ;;  %v1890_v11 = vmul.f32 %v3273_v46, %v1688_v54  ;;  %v1981_v14 = vpop.xlane.xlu1 %1980  ;;  %2573 = vrcp.f32 %v1979_v61 }
 0x41a   : > { %v1893_v52 = vmul.f32 %v3285_v1, %v1699_v42  ;;  %2575 = vrcp.f32 %v1981_v14 }
 0x41b   : > { %1950 = vadd.xlane.f32.xlu0 %v1890_v11  ;;  %v1891_v30 = vmul.f32 %v3276_v24, %v1691_v36  ;;  %v2568_v35 = vpop.eup %2567  ;;  %2577 = vrcp.f32 %v1975_v62 }
 0x41c   : > { %v2570_v38 = vpop.eup %2569  ;;  %2579 = vrcp.f32 %v1977_v3 }
 0x41d   : > { %1952 = vadd.xlane.f32.xlu1 %v1891_v30  ;;  %v3325_v8 = vpop.xlane.xlu0 %1982  ;;  %v2572_v33 = vpop.eup %2571 }
 0x41f   : > { %1954 = vadd.xlane.f32.xlu0 %v1892_v18  ;;  %v3327_v19 = vpop.xlane.xlu1 %1984 }
 0x421   : > { %1956 = vadd.xlane.f32.xlu1 %v1893_v52 }
 0x423   : > { %v2574_v0 = vpop.eup %2573 }
 0x424   : > { %v2576_v51 = vpop.eup %2575 }
 0x425   : > { %v3329_v46 = vpop.xlane.xlu0 %1986  ;;  %v2578_v56 = vpop.eup %2577 }
 0x426   : > { %v2580_v42 = vpop.eup %2579  ;;  %2581 = vrcp.f32 %v3329_v46 }
 0x427   : > { %v3331_v1 = vpop.xlane.xlu1 %1988 }
 0x428   : > { %2583 = vrcp.f32 %v3331_v1 }
 0x429   : > { %2585 = vrcp.f32 %v3325_v8 }
 0x42a   : > { %2587 = vrcp.f32 %v3327_v19 }
 0x42d   : > { %v3333_v24 = vpop.xlane.xlu0 %1990 }
 0x42f   : > { %v3335_v44 = vpop.xlane.xlu1 %1992 }
 0x430   : > { %v2582_v63 = vpop.eup %2581 }
 0x432   : > { %v2584_v6 = vpop.eup %2583 }
 0x433   : > { %v2586_v61 = vpop.eup %2585 }
 0x434   : > { %v2588_v19 = vpop.eup %2587 }
 0x435   : > { %v3337_v9 = vpop.xlane.xlu0 %1994 }
 0x436   : > { %2589 = vrcp.f32 %v3337_v9 }
 0x437   : > { %v3339_v12 = vpop.xlane.xlu1 %1996 }
 0x438   : > { %2591 = vrcp.f32 %v3339_v12 }
 0x439   : > { %v1899_v2 = vpop.xlane.xlu0 %1898  ;;  %2593 = vrcp.f32 %v3333_v24 }
 0x43a   : > { %v2056_v47 = vmul.f32 %v2558_v10, %v1899_v2  ;;  %2595 = vrcp.f32 %v3335_v44 }
 0x43b   : > { %v1901_v15 = vpop.xlane.xlu1 %1900 }
 0x43c   : > { %2089 = vst.msk [vmem:[%s3346_s20 + $0x10] sm:$0xff] %vm2086_vm1, %v2056_v47  ;;  %v2057_v32 = vmul.f32 %v2560_v13, %v1901_v15 }
 0x43d   : > { %v1895_v17 = vpop.xlane.xlu0 %1894 }
 0x43e   : > { %2090 = vst.msk [vmem:[%s3346_s20 + $0x18] sm:$0xff] %vm2086_vm1, %v2057_v32  ;;  %v2054_v28 = vmul.f32 %v2562_v34, %v1895_v17 }
 0x43f   : > { %v1897_v21 = vpop.xlane.xlu1 %1896 }
 0x440   : > { %2087 = vst.msk [vmem:[%s3346_s20] sm:$0xff] %vm2086_vm1, %v2054_v28  ;;  %v2055_v23 = vmul.f32 %v2564_v7, %v1897_v21  ;;  %v2590_v9 = vpop.eup %2589 }
 0x441   : > { %v3354_v27 = vpop.xlane.xlu0 %1998 }
 0x442   : > { %2088 = vst.msk [vmem:[%s3346_s20 + $0x8] sm:$0xff] %vm2086_vm1, %v2055_v23  ;;  %v2592_v47 = vpop.eup %2591 }
 0x443   : > { %v3358_v16 = vpop.xlane.xlu1 %2000  ;;  %v2594_v15 = vpop.eup %2593 }
 0x444   : > { %v2596_v34 = vpop.eup %2595 }
 0x445   : > { %v3360_v49 = vpop.xlane.xlu0 %2002 }
 0x446   : > { %2597 = vrcp.f32 %v3360_v49 }
 0x447   : > { %v3362_v22 = vpop.xlane.xlu1 %2004 }
 0x448   : > { %2599 = vrcp.f32 %v3362_v22 }
 0x449   : > { %v1907_v58 = vpop.xlane.xlu0 %1906  ;;  %2601 = vrcp.f32 %v3354_v27 }
 0x44a   : > { %v2060_v5 = vmul.f32 %v2566_v20, %v1907_v58  ;;  %2603 = vrcp.f32 %v3358_v16 }
 0x44b   : > { %v1909_v26 = vpop.xlane.xlu1 %1908 }
 0x44c   : > { %2093 = vst.msk [vmem:[%s3346_s20 + $0x30] sm:$0xff] %vm2086_vm1, %v2060_v5  ;;  %v2061_v40 = vmul.f32 %v2568_v35, %v1909_v26 }
 0x44d   : > { %v1903_v29 = vpop.xlane.xlu0 %1902 }
 0x44e   : > { %2094 = vst.msk [vmem:[%s3346_s20 + $0x38] sm:$0xff] %vm2086_vm1, %v2061_v40  ;;  %v2058_v31 = vmul.f32 %v2570_v38, %v1903_v29 }
 0x44f   : > { %v1905_v48 = vpop.xlane.xlu1 %1904 }
 0x450   : > { %2091 = vst.msk [vmem:[%s3346_s20 + $0x20] sm:$0xff] %vm2086_vm1, %v2058_v31  ;;  %v2059_v37 = vmul.f32 %v2572_v33, %v1905_v48  ;;  %v2598_v28 = vpop.eup %2597 }
 0x451   : > { %v3370_v59 = vpop.xlane.xlu0 %2006 }
 0x452   : > { %2092 = vst.msk [vmem:[%s3346_s20 + $0x28] sm:$0xff] %vm2086_vm1, %v2059_v37  ;;  %v2600_v23 = vpop.eup %2599 }
 0x453   : > { %v3374_v50 = vpop.xlane.xlu1 %2008  ;;  %v2602_v58 = vpop.eup %2601 }
 0x454   : > { %v2604_v35 = vpop.eup %2603 }
 0x455   : > { %v3376_v43 = vpop.xlane.xlu0 %2010 }
 0x456   : > { %2605 = vrcp.f32 %v3376_v43 }
 0x457   : > { %v3378_v45 = vpop.xlane.xlu1 %2012 }
 0x458   : > { %2607 = vrcp.f32 %v3378_v45 }
 0x459   : > { %v1915_v41 = vpop.xlane.xlu0 %1914  ;;  %2609 = vrcp.f32 %v3370_v59 }
 0x45a   : > { %v2064_v53 = vmul.f32 %v2574_v0, %v1915_v41  ;;  %2611 = vrcp.f32 %v3374_v50 }
 0x45b   : > { %v1917_v39 = vpop.xlane.xlu1 %1916 }
 0x45c   : > { %2097 = vst.msk [vmem:[%s3346_s20 + $0x50] sm:$0xff] %vm2086_vm1, %v2064_v53  ;;  %v2065_v55 = vmul.f32 %v2576_v51, %v1917_v39 }
 0x45d   : > { %v1911_v54 = vpop.xlane.xlu0 %1910 }
 0x45e   : > { %2098 = vst.msk [vmem:[%s3346_s20 + $0x58] sm:$0xff] %vm2086_vm1, %v2065_v55  ;;  %v2062_v60 = vmul.f32 %v2578_v56, %v1911_v54 }
 0x45f   : > { %v1913_v25 = vpop.xlane.xlu1 %1912 }
 0x460   : > { %2095 = vst.msk [vmem:[%s3346_s20 + $0x40] sm:$0xff] %vm2086_vm1, %v2062_v60  ;;  %v2063_v18 = vmul.f32 %v2580_v42, %v1913_v25  ;;  %v2606_v26 = vpop.eup %2605 }
 0x461   : > { %v3388_v57 = vpop.xlane.xlu0 %2014 }
 0x462   : > { %2096 = vst.msk [vmem:[%s3346_s20 + $0x48] sm:$0xff] %vm2086_vm1, %v2063_v18  ;;  %v2608_v29 = vpop.eup %2607  ;;  %2613 = vrcp.f32 %v3388_v57 }
 0x463   : > { %v3393_v36 = vpop.xlane.xlu1 %2016  ;;  %v2610_v48 = vpop.eup %2609 }
 0x464   : > { %v2612_v45 = vpop.eup %2611  ;;  %2615 = vrcp.f32 %v3393_v36 }
 0x465   : > { %v3396_v11 = vpop.xlane.xlu0 %2018 }
 0x466   : > { %2617 = vrcp.f32 %v3396_v11 }
 0x467   : > { %v3398_v52 = vpop.xlane.xlu1 %2020 }
 0x468   : > { %2619 = vrcp.f32 %v3398_v52 }
 0x469   : > { %v1923_v30 = vpop.xlane.xlu0 %1922 }
 0x46a   : > { %v2068_v4 = vmul.f32 %v2582_v63, %v1923_v30 }
 0x46b   : > { %v1925_v62 = vpop.xlane.xlu1 %1924 }
 0x46c   : > { %2101 = vst.msk [vmem:[%s3346_s20 + $0x70] sm:$0xff] %vm2086_vm1, %v2068_v4  ;;  %v2069_v3 = vmul.f32 %v2584_v6, %v1925_v62  ;;  %v2614_v0 = vpop.eup %2613 }
 0x46d   : > { %v1919_v14 = vpop.xlane.xlu0 %1918 }
 0x46e   : > { %2102 = vst.msk [vmem:[%s3346_s20 + $0x78] sm:$0xff] %vm2086_vm1, %v2069_v3  ;;  %v2066_v8 = vmul.f32 %v2586_v61, %v1919_v14  ;;  %v2616_v51 = vpop.eup %2615 }
 0x46f   : > { %v1921_v46 = vpop.xlane.xlu1 %1920 }
 0x470   : > { %2099 = vst.msk [vmem:[%s3346_s20 + $0x60] sm:$0xff] %vm2086_vm1, %v2066_v8  ;;  %v2067_v1 = vmul.f32 %v2588_v19, %v1921_v46  ;;  %v2618_v56 = vpop.eup %2617 }
 0x472   : > { %2100 = vst.msk [vmem:[%s3346_s20 + $0x68] sm:$0xff] %vm2086_vm1, %v2067_v1  ;;  %v2620_v42 = vpop.eup %2619 }
 0x477   : > { %v1931_v10 = vpop.xlane.xlu0 %1930 }
 0x478   : > { %v2072_v2 = vmul.f32 %v2590_v9, %v1931_v10 }
 0x479   : > { %v1933_v13 = vpop.xlane.xlu1 %1932 }
 0x47a   : > { %2105 = vst.msk [vmem:[%s3346_s20 + $0x90] sm:$0xff] %vm2086_vm1, %v2072_v2  ;;  %v2073_v12 = vmul.f32 %v2592_v47, %v1933_v13 }
 0x47b   : > { %v1927_v32 = vpop.xlane.xlu0 %1926 }
 0x47c   : > { %2106 = vst.msk [vmem:[%s3346_s20 + $0x98] sm:$0xff] %vm2086_vm1, %v2073_v12  ;;  %v2070_v24 = vmul.f32 %v2594_v15, %v1927_v32 }
 0x47d   : > { %v1929_v17 = vpop.xlane.xlu1 %1928 }
 0x47e   : > { %2103 = vst.msk [vmem:[%s3346_s20 + $0x80] sm:$0xff] %vm2086_vm1, %v2070_v24  ;;  %v2071_v44 = vmul.f32 %v2596_v34, %v1929_v17 }
 0x480   : > { %2104 = vst.msk [vmem:[%s3346_s20 + $0x88] sm:$0xff] %vm2086_vm1, %v2071_v44 }
 0x487   : > { %v1939_v7 = vpop.xlane.xlu0 %1938 }
 0x488   : > { %v2076_v21 = vmul.f32 %v2598_v28, %v1939_v7 }
 0x489   : > { %v1941_v49 = vpop.xlane.xlu1 %1940 }
 0x48a   : > { %2109 = vst.msk [vmem:[%s3346_s20 + $0xb0] sm:$0xff] %vm2086_vm1, %v2076_v21  ;;  %v2077_v20 = vmul.f32 %v2600_v23, %v1941_v49 }
 0x48b   : > { %v1935_v5 = vpop.xlane.xlu0 %1934 }
 0x48c   : > { %2110 = vst.msk [vmem:[%s3346_s20 + $0xb8] sm:$0xff] %vm2086_vm1, %v2077_v20  ;;  %v2074_v22 = vmul.f32 %v2602_v58, %v1935_v5 }
 0x48d   : > { %v1937_v27 = vpop.xlane.xlu1 %1936 }
 0x48e   : > { %2107 = vst.msk [vmem:[%s3346_s20 + $0xa0] sm:$0xff] %vm2086_vm1, %v2074_v22  ;;  %v2075_v16 = vmul.f32 %v2604_v35, %v1937_v27 }
 0x490   : > { %2108 = vst.msk [vmem:[%s3346_s20 + $0xa8] sm:$0xff] %vm2086_vm1, %v2075_v16 }
 0x497   : > { %v1947_v40 = vpop.xlane.xlu0 %1946 }
 0x498   : > { %v2080_v38 = vmul.f32 %v2606_v26, %v1947_v40 }
 0x499   : > { %v1949_v31 = vpop.xlane.xlu1 %1948 }
 0x49a   : > { %2113 = vst.msk [vmem:[%s3346_s20 + $0xd0] sm:$0xff] %vm2086_vm1, %v2080_v38  ;;  %v2081_v33 = vmul.f32 %v2608_v29, %v1949_v31 }
 0x49b   : > { %v1943_v37 = vpop.xlane.xlu0 %1942 }
 0x49c   : > { %2114 = vst.msk [vmem:[%s3346_s20 + $0xd8] sm:$0xff] %vm2086_vm1, %v2081_v33  ;;  %v2078_v43 = vmul.f32 %v2610_v48, %v1943_v37 }
 0x49d   : > { %v1945_v59 = vpop.xlane.xlu1 %1944 }
 0x49e   : > { %2111 = vst.msk [vmem:[%s3346_s20 + $0xc0] sm:$0xff] %vm2086_vm1, %v2078_v43  ;;  %v2079_v50 = vmul.f32 %v2612_v45, %v1945_v59 }
 0x4a0   : > { %2112 = vst.msk [vmem:[%s3346_s20 + $0xc8] sm:$0xff] %vm2086_vm1, %v2079_v50 }
 0x4a8   : > { %v1951_v41 = vpop.xlane.xlu0 %1950 }
 0x4a9   : > { %v2082_v53 = vmul.f32 %v2614_v0, %v1951_v41 }
 0x4aa   : > { %v1953_v39 = vpop.xlane.xlu1 %1952 }
 0x4ab   : > { %2115 = vst.msk [vmem:[%s3346_s20 + $0xe0] sm:$0xff] %vm2086_vm1, %v2082_v53  ;;  %v2083_v55 = vmul.f32 %v2616_v51, %v1953_v39 }
 0x4ac   : > { %v1955_v54 = vpop.xlane.xlu0 %1954 }
 0x4ad   : > { %2116 = vst.msk [vmem:[%s3346_s20 + $0xe8] sm:$0xff] %vm2086_vm1, %v2083_v55  ;;  %v2084_v60 = vmul.f32 %v2618_v56, %v1955_v54 }
 0x4ae   : > { %v1957_v25 = vpop.xlane.xlu1 %1956 }
 0x4af   : > { %2117 = vst.msk [vmem:[%s3346_s20 + $0xf0] sm:$0xff] %vm2086_vm1, %v2084_v60  ;;  %v2085_v18 = vmul.f32 %v2620_v42, %v1957_v25 }
 0x4b1   : > { %2118 = vst.msk [vmem:[%s3346_s20 + $0xf8] sm:$0xff] %vm2086_vm1, %v2085_v18 }
 0x4b2 PF: > { %s14_s12 = sadd.s32 1, %s2659_s12  }
 0x4b3   : > { %p11_p3 = scmp.ge.s32.totalorder %s14_s12, 4  }
 0x4b5   :  { %13 = sbr.rel (!%p11_p3) target bundleno = 1 (0x1), region = 69 }
 0x4bc   :  { %2141 = vsyncpa [#allocation3], 1 }
 0x4bd   :  { %2143 = vsyncpa [#allocation3 + $0x1], 1 }

</bundles_post_ra>
